<compile_context>
chip_gen: v6e
topology: v6e:2x2x1
jax: 0.10.0
libtpu: 0.0.40
codegen_flags: <defaults>
</compile_context>

<pallas_src>
import math

import jax
import jax.numpy as jnp
from jax import lax
from jax.experimental import pallas as pl
from jax.experimental.pallas import tpu as pltpu

_LANE = 128     # lane width  -> pad H to a multiple of this
_SUBLANE = 8    # sublane width -> pad B to a multiple of this


def _round_up(n, m):
    return ((n + m - 1) // m) * m


def _sigmoid(x):
    # Exact identity: sigmoid(x) = 0.5 * (1 + tanh(x/2)).  One EUP op instead
    # of two (exp + reciprocal); the mul/add go to spare VALU slots.
    return 0.5 * jnp.tanh(0.5 * x) + 0.5


def lstm_kernel(x_ref, w_ih_ref, w_hh_ref, b_ref, w_out_ref, b_out_ref,
                out_ref, xp_ref):
    """Whole recurrent loop + final head in one kernel.

    x_ref:     (T*Bp, I)    time-major, batch-padded input, flattened over (T, Bp)
    w_ih_ref:  (I, 4*Hp)    fused input->gate weights [i | f | g | o]
    w_hh_ref:  (Hp, 4*Hp)   fused hidden->gate weights
    b_ref:     (1, 4*Hp)    fused bias (b_ih + b_hh), zero in padded lanes
    w_out_ref: (1, Hp)      linear head weight as a row vector (O == 1)
    b_out_ref: (1, 1)       linear head bias
    out_ref:   (Bp, 1)      predictions from the last timestep hidden state
    xp_ref:    (T*Bp, 4*Hp) VMEM scratch: hoisted input projection
    """
    Bp = out_ref.shape[0]
    Hp = w_hh_ref.shape[0]
    I = x_ref.shape[1]
    T = x_ref.shape[0] // Bp

    # --- Hoisted input projection for all T timesteps, bias folded in.
    # Written to VMEM scratch so it is not 32 live vregs across the loop.
    if I == 1:
        # VPU broadcast outer product; keeps the MXU free to latch W_hh.
        xp_ref[...] = x_ref[...] * w_ih_ref[...] + b_ref[...]
    else:
        xp_ref[...] = (
            jnp.dot(x_ref[...], w_ih_ref[...], preferred_element_type=jnp.float32)
            + b_ref[...]
        )

    h = jnp.zeros((Bp, Hp), jnp.float32)
    c = jnp.zeros((Bp, Hp), jnp.float32)

    # --- Recurrence: one fused (Bp,Hp)@(Hp,4Hp) MXU matmul per step, statically
    # unrolled (T is small) so the scheduler can overlap EUP/VPU with the MXU.
    # The xp slice is loaded from scratch per step; W_hh is indexed at the dot
    # site so its live range is bounded by the compiler, not by us.
    for t in range(T):
        gates = xp_ref[t * Bp:(t + 1) * Bp, :] + jnp.dot(
            h, w_hh_ref[...], preferred_element_type=jnp.float32
        )  # (Bp, 4*Hp); gate slices below are whole-vreg (Hp is a multiple of 128)
        i_g = _sigmoid(gates[:, 0 * Hp:1 * Hp])
        f_g = _sigmoid(gates[:, 1 * Hp:2 * Hp])
        g_g = jnp.tanh(gates[:, 2 * Hp:3 * Hp])
        o_g = _sigmoid(gates[:, 3 * Hp:4 * Hp])
        c = f_g * c + i_g * g_g
        h = o_g * jnp.tanh(c)

    # TODO(synk): nn.Dropout(0.2) on lstm_out[:, -1, :] is identity in eval mode;
    # training-mode stochastic dropout is intentionally not reproduced here.

    # --- Head (O == 1): VPU multiply + lane reduction beats an N=1 MXU matmul.
    out_ref[...] = (
        jnp.sum(h * w_out_ref[...], axis=-1, keepdims=True) + b_out_ref[...]
    )


def lstm_forward(x, kernel_params):
    """x: (B, T, I) batch-first (PyTorch convention). Returns (B, 1)."""
    w_ih_f, w_hh_f, b_f, w_out_row, b_out = kernel_params
    B, T, I = x.shape
    Hp = w_hh_f.shape[0]
    Bp = _round_up(B, _SUBLANE)

    # Time-major, pad batch to the sublane width, flatten (T, Bp) -> rows.
    x_tm = jnp.transpose(x, (1, 0, 2)).astype(jnp.float32)          # (T, B, I)
    x_tm = jnp.pad(x_tm, ((0, 0), (0, Bp - B), (0, 0)))             # (T, Bp, I)
    x_2d = x_tm.reshape(T * Bp, I)                                  # (T*Bp, I)

    args = (x_2d, w_ih_f, w_hh_f, b_f, w_out_row, b_out)

    io_bytes = sum(int(a.size) * a.dtype.itemsize for a in args) + Bp * 4
    xp_bytes = T * Bp * w_ih_f.shape[1] * 4                         # xp scratch
    # Cap at 32 MiB: v7x only has 64 MiB VMEM per TensorCore.
    vmem_limit = min((io_bytes + xp_bytes) * 2 + (4 << 20), 32 << 20)

    flops = (
        2 * T * Bp * max(I, 1) * (4 * Hp)  # hoisted input projection
        + 2 * T * Bp * Hp * (4 * Hp)       # recurrence
        + 2 * Bp * Hp                      # head reduction
    )
    transcendentals = 5 * T * Bp * Hp      # 5 tanh per element per step

    vmem = pl.BlockSpec(memory_space=pltpu.MemorySpace.VMEM)
    out = pl.pallas_call(
        lstm_kernel,
        out_shape=jax.ShapeDtypeStruct((Bp, 1), jnp.float32),
        in_specs=[vmem] * len(args),
        out_specs=vmem,
        scratch_shapes=[pltpu.VMEM((T * Bp, w_ih_f.shape[1]), jnp.float32)],
        compiler_params=pltpu.CompilerParams(vmem_limit_bytes=int(vmem_limit)),
        cost_estimate=pl.CostEstimate(
            flops=int(flops),
            transcendentals=int(transcendentals),
            bytes_accessed=int(io_bytes),
        ),
    )(*args)
    return out[:B]


def init_params(key, input_size, hidden, output_size):
    """Deterministic init mimicking PyTorch's U(-1/sqrt(H), 1/sqrt(H))."""
    k = 1.0 / math.sqrt(hidden)
    ks = jax.random.split(key, 6)
    w_ih = jax.random.uniform(ks[0], (4, input_size, hidden), jnp.float32, -k, k)
    w_hh = jax.random.uniform(ks[1], (4, hidden, hidden), jnp.float32, -k, k)
    b_ih = jax.random.uniform(ks[2], (4, 1, hidden), jnp.float32, -k, k)
    b_hh = jax.random.uniform(ks[3], (4, 1, hidden), jnp.float32, -k, k)
    w_out = jax.random.uniform(ks[4], (hidden, output_size), jnp.float32, -k, k)
    b_out = jax.random.uniform(ks[5], (1, output_size), jnp.float32, -k, k)
    return (w_ih, w_hh, b_ih + b_hh, w_out, b_out)


def pack_params(params):
    """Fuse the four gates and zero-pad H to the lane width for the kernel."""
    w_ih, w_hh, b, w_out, b_out = params
    _, I, H = w_ih.shape
    O = w_out.shape[1]
    assert O == 1, "head is implemented as a lane reduction (output_size == 1)"
    Hp = _round_up(H, _LANE)

    # (4, I, H) -> (I, 4*Hp); padded gate columns are zero (no leakage).
    w_ih_f = jnp.pad(w_ih, ((0, 0), (0, 0), (0, Hp - H)))
    w_ih_f = jnp.transpose(w_ih_f, (1, 0, 2)).reshape(I, 4 * Hp)

    # (4, H, H) -> (Hp, 4*Hp); padded rows/cols are zero.
    w_hh_f = jnp.pad(w_hh, ((0, 0), (0, Hp - H), (0, Hp - H)))
    w_hh_f = jnp.transpose(w_hh_f, (1, 0, 2)).reshape(Hp, 4 * Hp)

    # (4, 1, H) -> (1, 4*Hp); zero bias in padded lanes keeps padded h == 0.
    b_f = jnp.pad(b, ((0, 0), (0, 0), (0, Hp - H))).reshape(1, 4 * Hp)

    # (H, 1) -> (1, Hp) row vector for the reduction head.
    w_out_row = jnp.pad(w_out, ((0, Hp - H), (0, 0))).reshape(Hp, 1).T

    return (w_ih_f, w_hh_f, b_f, w_out_row, b_out)


def lstm_reference(x, params):
    """Pure-JAX reference of the same forward pass (unpadded, unfused)."""
    w_ih, w_hh, b, w_out, b_out = params
    B = x.shape[0]
    H = w_hh.shape[1]
    h = jnp.zeros((B, H), jnp.float32)
    c = jnp.zeros((B, H), jnp.float32)

    def step(carry, x_t):
        h, c = carry
        gates = [
            jnp.dot(x_t, w_ih[k]) + jnp.dot(h, w_hh[k]) + b[k] for k in range(4)
        ]
        i_g = jax.nn.sigmoid(gates[0])
        f_g = jax.nn.sigmoid(gates[1])
        g_g = jnp.tanh(gates[2])
        o_g = jax.nn.sigmoid(gates[3])
        c_new = f_g * c + i_g * g_g
        h_new = o_g * jnp.tanh(c_new)
        return (h_new, c_new), None

    (h, _), _ = lax.scan(step, (h, c), jnp.transpose(x, (1, 0, 2)))
    return jnp.dot(h, w_out) + b_out


if __name__ == "__main__":
    batch, seq, input_size = 2, 8, 1
    hidden, output_size = 50, 1

    key = jax.random.PRNGKey(0)
    k_x, k_p = jax.random.split(key)
    x = jax.random.normal(k_x, (batch, seq, input_size), dtype=jnp.float32)
    params = init_params(k_p, input_size, hidden, output_size)
    kernel_params = pack_params(params)

    out = lstm_forward(x, kernel_params)
    out = jax.block_until_ready(out)

    ref = lstm_reference(x, params)
    assert out.shape == (batch, output_size)
    assert jnp.allclose(out, ref, atol=1e-4, rtol=1e-4), (out, ref)

    print("KERNEL_OK")
</pallas_src>

<mosaic_0001>
module attributes {stable_mosaic.version = 11 : i64} {
  func.func @lstm_kernel(%arg0: memref<64x1xf32, #tpu.memory_space<vmem>>, %arg1: memref<1x512xf32, #tpu.memory_space<vmem>>, %arg2: memref<128x512xf32, #tpu.memory_space<vmem>>, %arg3: memref<1x512xf32, #tpu.memory_space<vmem>>, %arg4: memref<1x128xf32, #tpu.memory_space<vmem>>, %arg5: memref<1x1xf32, #tpu.memory_space<vmem>>, %arg6: memref<8x1xf32, #tpu.memory_space<vmem>>, %arg7: memref<64x512xf32, #tpu.memory_space<vmem>>) attributes {dimension_semantics = [], scalar_prefetch = 0 : i64, scratch_operands = 1 : i64, tpu.core_type = #tpu.core_type<tc>} {
    %c0 = arith.constant 0 : index
    %c0_0 = arith.constant 0 : index
    %0 = vector.load %arg0[%c0, %c0_0] : memref<64x1xf32, #tpu.memory_space<vmem>>, vector<64x1xf32>
    %c0_1 = arith.constant 0 : index
    %c0_2 = arith.constant 0 : index
    %1 = vector.load %arg1[%c0_1, %c0_2] : memref<1x512xf32, #tpu.memory_space<vmem>>, vector<1x512xf32>
    %2 = vector.broadcast %0 : vector<64x1xf32> to vector<64x512xf32>
    %3 = vector.broadcast %1 : vector<1x512xf32> to vector<64x512xf32>
    %4 = arith.mulf %2, %3 : vector<64x512xf32>
    %c0_3 = arith.constant 0 : index
    %c0_4 = arith.constant 0 : index
    %5 = vector.load %arg3[%c0_3, %c0_4] : memref<1x512xf32, #tpu.memory_space<vmem>>, vector<1x512xf32>
    %6 = vector.broadcast %5 : vector<1x512xf32> to vector<64x512xf32>
    %7 = arith.addf %4, %6 : vector<64x512xf32>
    %c0_5 = arith.constant 0 : index
    %c0_6 = arith.constant 0 : index
    %8 = vector.load %arg7[%c0_5, %c0_6] : memref<64x512xf32, #tpu.memory_space<vmem>>, vector<64x512xf32>
    tpu.vector_store %arg7[%c0_5, %c0_6], %7 {strides = array<i32>} : memref<64x512xf32, #tpu.memory_space<vmem>>, vector<64x512xf32>,
    %cst = arith.constant 0.000000e+00 : f32
    %9 = vector.broadcast %cst : f32 to vector<8x128xf32>
    %cst_7 = arith.constant 0.000000e+00 : f32
    %10 = vector.broadcast %cst_7 : f32 to vector<8x128xf32>
    %c0_8 = arith.constant 0 : index
    %c0_9 = arith.constant 0 : index
    %11 = vector.load %arg7[%c0_8, %c0_9] : memref<64x512xf32, #tpu.memory_space<vmem>>, vector<8x512xf32>
    %c0_10 = arith.constant 0 : index
    %c0_11 = arith.constant 0 : index
    %12 = vector.load %arg2[%c0_10, %c0_11] : memref<128x512xf32, #tpu.memory_space<vmem>>, vector<128x512xf32>
    %cst_12 = arith.constant dense<0.000000e+00> : vector<8x512xf32>
    %13 = tpu.matmul %9, %12, %cst_12 {dimension_numbers = #tpu.dot_dimension_numbers<[1], [0], [0], [1], [0, 0, 1, 1], [], []>} : vector<8x128xf32>, vector<128x512xf32>, vector<8x512xf32> -> vector<8x512xf32>
    %14 = arith.addf %11, %13 : vector<8x512xf32>
    %15 = vector.extract_strided_slice %14 {offsets = [0, 0], sizes = [8, 128], strides = [1, 1]} : vector<8x512xf32> to vector<8x128xf32>
    %cst_13 = arith.constant 5.000000e-01 : f32
    %16 = vector.broadcast %cst_13 : f32 to vector<8x128xf32>
    %17 = arith.mulf %16, %15 : vector<8x128xf32>
    %18 = math.tanh %17 : vector<8x128xf32>
    %cst_14 = arith.constant 5.000000e-01 : f32
    %19 = vector.broadcast %cst_14 : f32 to vector<8x128xf32>
    %20 = arith.mulf %19, %18 : vector<8x128xf32>
    %cst_15 = arith.constant 5.000000e-01 : f32
    %21 = vector.broadcast %cst_15 : f32 to vector<8x128xf32>
    %22 = arith.addf %20, %21 : vector<8x128xf32>
    %23 = vector.extract_strided_slice %14 {offsets = [0, 128], sizes = [8, 128], strides = [1, 1]} : vector<8x512xf32> to vector<8x128xf32>
    %cst_16 = arith.constant 5.000000e-01 : f32
    %24 = vector.broadcast %cst_16 : f32 to vector<8x128xf32>
    %25 = arith.mulf %24, %23 : vector<8x128xf32>
    %26 = math.tanh %25 : vector<8x128xf32>
    %cst_17 = arith.constant 5.000000e-01 : f32
    %27 = vector.broadcast %cst_17 : f32 to vector<8x128xf32>
    %28 = arith.mulf %27, %26 : vector<8x128xf32>
    %cst_18 = arith.constant 5.000000e-01 : f32
    %29 = vector.broadcast %cst_18 : f32 to vector<8x128xf32>
    %30 = arith.addf %28, %29 : vector<8x128xf32>
    %31 = vector.extract_strided_slice %14 {offsets = [0, 256], sizes = [8, 128], strides = [1, 1]} : vector<8x512xf32> to vector<8x128xf32>
    %32 = math.tanh %31 : vector<8x128xf32>
    %33 = vector.extract_strided_slice %14 {offsets = [0, 384], sizes = [8, 128], strides = [1, 1]} : vector<8x512xf32> to vector<8x128xf32>
    %cst_19 = arith.constant 5.000000e-01 : f32
    %34 = vector.broadcast %cst_19 : f32 to vector<8x128xf32>
    %35 = arith.mulf %34, %33 : vector<8x128xf32>
    %36 = math.tanh %35 : vector<8x128xf32>
    %cst_20 = arith.constant 5.000000e-01 : f32
    %37 = vector.broadcast %cst_20 : f32 to vector<8x128xf32>
    %38 = arith.mulf %37, %36 : vector<8x128xf32>
    %cst_21 = arith.constant 5.000000e-01 : f32
    %39 = vector.broadcast %cst_21 : f32 to vector<8x128xf32>
    %40 = arith.addf %38, %39 : vector<8x128xf32>
    %41 = arith.mulf %30, %10 : vector<8x128xf32>
    %42 = arith.mulf %22, %32 : vector<8x128xf32>
    %43 = arith.addf %41, %42 : vector<8x128xf32>
    %44 = math.tanh %43 : vector<8x128xf32>
    %45 = arith.mulf %40, %44 : vector<8x128xf32>
    %c8 = arith.constant 8 : index
    %c0_22 = arith.constant 0 : index
    %46 = vector.load %arg7[%c8, %c0_22] : memref<64x512xf32, #tpu.memory_space<vmem>>, vector<8x512xf32>
    %c0_23 = arith.constant 0 : index
    %c0_24 = arith.constant 0 : index
    %47 = vector.load %arg2[%c0_23, %c0_24] : memref<128x512xf32, #tpu.memory_space<vmem>>, vector<128x512xf32>
    %cst_25 = arith.constant dense<0.000000e+00> : vector<8x512xf32>
    %48 = tpu.matmul %45, %47, %cst_25 {dimension_numbers = #tpu.dot_dimension_numbers<[1], [0], [0], [1], [0, 0, 1, 1], [], []>} : vector<8x128xf32>, vector<128x512xf32>, vector<8x512xf32> -> vector<8x512xf32>
    %49 = arith.addf %46, %48 : vector<8x512xf32>
    %50 = vector.extract_strided_slice %49 {offsets = [0, 0], sizes = [8, 128], strides = [1, 1]} : vector<8x512xf32> to vector<8x128xf32>
    %cst_26 = arith.constant 5.000000e-01 : f32
    %51 = vector.broadcast %cst_26 : f32 to vector<8x128xf32>
    %52 = arith.mulf %51, %50 : vector<8x128xf32>
    %53 = math.tanh %52 : vector<8x128xf32>
    %cst_27 = arith.constant 5.000000e-01 : f32
    %54 = vector.broadcast %cst_27 : f32 to vector<8x128xf32>
    %55 = arith.mulf %54, %53 : vector<8x128xf32>
    %cst_28 = arith.constant 5.000000e-01 : f32
    %56 = vector.broadcast %cst_28 : f32 to vector<8x128xf32>
    %57 = arith.addf %55, %56 : vector<8x128xf32>
    %58 = vector.extract_strided_slice %49 {offsets = [0, 128], sizes = [8, 128], strides = [1, 1]} : vector<8x512xf32> to vector<8x128xf32>
    %cst_29 = arith.constant 5.000000e-01 : f32
    %59 = vector.broadcast %cst_29 : f32 to vector<8x128xf32>
    %60 = arith.mulf %59, %58 : vector<8x128xf32>
    %61 = math.tanh %60 : vector<8x128xf32>
    %cst_30 = arith.constant 5.000000e-01 : f32
    %62 = vector.broadcast %cst_30 : f32 to vector<8x128xf32>
    %63 = arith.mulf %62, %61 : vector<8x128xf32>
    %cst_31 = arith.constant 5.000000e-01 : f32
    %64 = vector.broadcast %cst_31 : f32 to vector<8x128xf32>
    %65 = arith.addf %63, %64 : vector<8x128xf32>
    %66 = vector.extract_strided_slice %49 {offsets = [0, 256], sizes = [8, 128], strides = [1, 1]} : vector<8x512xf32> to vector<8x128xf32>
    %67 = math.tanh %66 : vector<8x128xf32>
    %68 = vector.extract_strided_slice %49 {offsets = [0, 384], sizes = [8, 128], strides = [1, 1]} : vector<8x512xf32> to vector<8x128xf32>
    %cst_32 = arith.constant 5.000000e-01 : f32
    %69 = vector.broadcast %cst_32 : f32 to vector<8x128xf32>
    %70 = arith.mulf %69, %68 : vector<8x128xf32>
    %71 = math.tanh %70 : vector<8x128xf32>
    %cst_33 = arith.constant 5.000000e-01 : f32
    %72 = vector.broadcast %cst_33 : f32 to vector<8x128xf32>
    %73 = arith.mulf %72, %71 : vector<8x128xf32>
    %cst_34 = arith.constant 5.000000e-01 : f32
    %74 = vector.broadcast %cst_34 : f32 to vector<8x128xf32>
    %75 = arith.addf %73, %74 : vector<8x128xf32>
    %76 = arith.mulf %65, %43 : vector<8x128xf32>
    %77 = arith.mulf %57, %67 : vector<8x128xf32>
    %78 = arith.addf %76, %77 : vector<8x128xf32>
    %79 = math.tanh %78 : vector<8x128xf32>
    %80 = arith.mulf %75, %79 : vector<8x128xf32>
    %c16 = arith.constant 16 : index
    %c0_35 = arith.constant 0 : index
    %81 = vector.load %arg7[%c16, %c0_35] : memref<64x512xf32, #tpu.memory_space<vmem>>, vector<8x512xf32>
    %c0_36 = arith.constant 0 : index
    %c0_37 = arith.constant 0 : index
    %82 = vector.load %arg2[%c0_36, %c0_37] : memref<128x512xf32, #tpu.memory_space<vmem>>, vector<128x512xf32>
    %cst_38 = arith.constant dense<0.000000e+00> : vector<8x512xf32>
    %83 = tpu.matmul %80, %82, %cst_38 {dimension_numbers = #tpu.dot_dimension_numbers<[1], [0], [0], [1], [0, 0, 1, 1], [], []>} : vector<8x128xf32>, vector<128x512xf32>, vector<8x512xf32> -> vector<8x512xf32>
    %84 = arith.addf %81, %83 : vector<8x512xf32>
    %85 = vector.extract_strided_slice %84 {offsets = [0, 0], sizes = [8, 128], strides = [1, 1]} : vector<8x512xf32> to vector<8x128xf32>
    %cst_39 = arith.constant 5.000000e-01 : f32
    %86 = vector.broadcast %cst_39 : f32 to vector<8x128xf32>
    %87 = arith.mulf %86, %85 : vector<8x128xf32>
    %88 = math.tanh %87 : vector<8x128xf32>
    %cst_40 = arith.constant 5.000000e-01 : f32
    %89 = vector.broadcast %cst_40 : f32 to vector<8x128xf32>
    %90 = arith.mulf %89, %88 : vector<8x128xf32>
    %cst_41 = arith.constant 5.000000e-01 : f32
    %91 = vector.broadcast %cst_41 : f32 to vector<8x128xf32>
    %92 = arith.addf %90, %91 : vector<8x128xf32>
    %93 = vector.extract_strided_slice %84 {offsets = [0, 128], sizes = [8, 128], strides = [1, 1]} : vector<8x512xf32> to vector<8x128xf32>
    %cst_42 = arith.constant 5.000000e-01 : f32
    %94 = vector.broadcast %cst_42 : f32 to vector<8x128xf32>
    %95 = arith.mulf %94, %93 : vector<8x128xf32>
    %96 = math.tanh %95 : vector<8x128xf32>
    %cst_43 = arith.constant 5.000000e-01 : f32
    %97 = vector.broadcast %cst_43 : f32 to vector<8x128xf32>
    %98 = arith.mulf %97, %96 : vector<8x128xf32>
    %cst_44 = arith.constant 5.000000e-01 : f32
    %99 = vector.broadcast %cst_44 : f32 to vector<8x128xf32>
    %100 = arith.addf %98, %99 : vector<8x128xf32>
    %101 = vector.extract_strided_slice %84 {offsets = [0, 256], sizes = [8, 128], strides = [1, 1]} : vector<8x512xf32> to vector<8x128xf32>
    %102 = math.tanh %101 : vector<8x128xf32>
    %103 = vector.extract_strided_slice %84 {offsets = [0, 384], sizes = [8, 128], strides = [1, 1]} : vector<8x512xf32> to vector<8x128xf32>
    %cst_45 = arith.constant 5.000000e-01 : f32
    %104 = vector.broadcast %cst_45 : f32 to vector<8x128xf32>
    %105 = arith.mulf %104, %103 : vector<8x128xf32>
    %106 = math.tanh %105 : vector<8x128xf32>
    %cst_46 = arith.constant 5.000000e-01 : f32
    %107 = vector.broadcast %cst_46 : f32 to vector<8x128xf32>
    %108 = arith.mulf %107, %106 : vector<8x128xf32>
    %cst_47 = arith.constant 5.000000e-01 : f32
    %109 = vector.broadcast %cst_47 : f32 to vector<8x128xf32>
    %110 = arith.addf %108, %109 : vector<8x128xf32>
    %111 = arith.mulf %100, %78 : vector<8x128xf32>
    %112 = arith.mulf %92, %102 : vector<8x128xf32>
    %113 = arith.addf %111, %112 : vector<8x128xf32>
    %114 = math.tanh %113 : vector<8x128xf32>
    %115 = arith.mulf %110, %114 : vector<8x128xf32>
    %c24 = arith.constant 24 : index
    %c0_48 = arith.constant 0 : index
    %116 = vector.load %arg7[%c24, %c0_48] : memref<64x512xf32, #tpu.memory_space<vmem>>, vector<8x512xf32>
    %c0_49 = arith.constant 0 : index
    %c0_50 = arith.constant 0 : index
    %117 = vector.load %arg2[%c0_49, %c0_50] : memref<128x512xf32, #tpu.memory_space<vmem>>, vector<128x512xf32>
    %cst_51 = arith.constant dense<0.000000e+00> : vector<8x512xf32>
    %118 = tpu.matmul %115, %117, %cst_51 {dimension_numbers = #tpu.dot_dimension_numbers<[1], [0], [0], [1], [0, 0, 1, 1], [], []>} : vector<8x128xf32>, vector<128x512xf32>, vector<8x512xf32> -> vector<8x512xf32>
    %119 = arith.addf %116, %118 : vector<8x512xf32>
    %120 = vector.extract_strided_slice %119 {offsets = [0, 0], sizes = [8, 128], strides = [1, 1]} : vector<8x512xf32> to vector<8x128xf32>
    %cst_52 = arith.constant 5.000000e-01 : f32
    %121 = vector.broadcast %cst_52 : f32 to vector<8x128xf32>
    %122 = arith.mulf %121, %120 : vector<8x128xf32>
    %123 = math.tanh %122 : vector<8x128xf32>
    %cst_53 = arith.constant 5.000000e-01 : f32
    %124 = vector.broadcast %cst_53 : f32 to vector<8x128xf32>
    %125 = arith.mulf %124, %123 : vector<8x128xf32>
    %cst_54 = arith.constant 5.000000e-01 : f32
    %126 = vector.broadcast %cst_54 : f32 to vector<8x128xf32>
    %127 = arith.addf %125, %126 : vector<8x128xf32>
    %128 = vector.extract_strided_slice %119 {offsets = [0, 128], sizes = [8, 128], strides = [1, 1]} : vector<8x512xf32> to vector<8x128xf32>
    %cst_55 = arith.constant 5.000000e-01 : f32
    %129 = vector.broadcast %cst_55 : f32 to vector<8x128xf32>
    %130 = arith.mulf %129, %128 : vector<8x128xf32>
    %131 = math.tanh %130 : vector<8x128xf32>
    %cst_56 = arith.constant 5.000000e-01 : f32
    %132 = vector.broadcast %cst_56 : f32 to vector<8x128xf32>
    %133 = arith.mulf %132, %131 : vector<8x128xf32>
    %cst_57 = arith.constant 5.000000e-01 : f32
    %134 = vector.broadcast %cst_57 : f32 to vector<8x128xf32>
    %135 = arith.addf %133, %134 : vector<8x128xf32>
    %136 = vector.extract_strided_slice %119 {offsets = [0, 256], sizes = [8, 128], strides = [1, 1]} : vector<8x512xf32> to vector<8x128xf32>
    %137 = math.tanh %136 : vector<8x128xf32>
    %138 = vector.extract_strided_slice %119 {offsets = [0, 384], sizes = [8, 128], strides = [1, 1]} : vector<8x512xf32> to vector<8x128xf32>
    %cst_58 = arith.constant 5.000000e-01 : f32
    %139 = vector.broadcast %cst_58 : f32 to vector<8x128xf32>
    %140 = arith.mulf %139, %138 : vector<8x128xf32>
    %141 = math.tanh %140 : vector<8x128xf32>
    %cst_59 = arith.constant 5.000000e-01 : f32
    %142 = vector.broadcast %cst_59 : f32 to vector<8x128xf32>
    %143 = arith.mulf %142, %141 : vector<8x128xf32>
    %cst_60 = arith.constant 5.000000e-01 : f32
    %144 = vector.broadcast %cst_60 : f32 to vector<8x128xf32>
    %145 = arith.addf %143, %144 : vector<8x128xf32>
    %146 = arith.mulf %135, %113 : vector<8x128xf32>
    %147 = arith.mulf %127, %137 : vector<8x128xf32>
    %148 = arith.addf %146, %147 : vector<8x128xf32>
    %149 = math.tanh %148 : vector<8x128xf32>
    %150 = arith.mulf %145, %149 : vector<8x128xf32>
    %c32 = arith.constant 32 : index
    %c0_61 = arith.constant 0 : index
    %151 = vector.load %arg7[%c32, %c0_61] : memref<64x512xf32, #tpu.memory_space<vmem>>, vector<8x512xf32>
    %c0_62 = arith.constant 0 : index
    %c0_63 = arith.constant 0 : index
    %152 = vector.load %arg2[%c0_62, %c0_63] : memref<128x512xf32, #tpu.memory_space<vmem>>, vector<128x512xf32>
    %cst_64 = arith.constant dense<0.000000e+00> : vector<8x512xf32>
    %153 = tpu.matmul %150, %152, %cst_64 {dimension_numbers = #tpu.dot_dimension_numbers<[1], [0], [0], [1], [0, 0, 1, 1], [], []>} : vector<8x128xf32>, vector<128x512xf32>, vector<8x512xf32> -> vector<8x512xf32>
    %154 = arith.addf %151, %153 : vector<8x512xf32>
    %155 = vector.extract_strided_slice %154 {offsets = [0, 0], sizes = [8, 128], strides = [1, 1]} : vector<8x512xf32> to vector<8x128xf32>
    %cst_65 = arith.constant 5.000000e-01 : f32
    %156 = vector.broadcast %cst_65 : f32 to vector<8x128xf32>
    %157 = arith.mulf %156, %155 : vector<8x128xf32>
    %158 = math.tanh %157 : vector<8x128xf32>
    %cst_66 = arith.constant 5.000000e-01 : f32
    %159 = vector.broadcast %cst_66 : f32 to vector<8x128xf32>
    %160 = arith.mulf %159, %158 : vector<8x128xf32>
    %cst_67 = arith.constant 5.000000e-01 : f32
    %161 = vector.broadcast %cst_67 : f32 to vector<8x128xf32>
    %162 = arith.addf %160, %161 : vector<8x128xf32>
    %163 = vector.extract_strided_slice %154 {offsets = [0, 128], sizes = [8, 128], strides = [1, 1]} : vector<8x512xf32> to vector<8x128xf32>
    %cst_68 = arith.constant 5.000000e-01 : f32
    %164 = vector.broadcast %cst_68 : f32 to vector<8x128xf32>
    %165 = arith.mulf %164, %163 : vector<8x128xf32>
    %166 = math.tanh %165 : vector<8x128xf32>
    %cst_69 = arith.constant 5.000000e-01 : f32
    %167 = vector.broadcast %cst_69 : f32 to vector<8x128xf32>
    %168 = arith.mulf %167, %166 : vector<8x128xf32>
    %cst_70 = arith.constant 5.000000e-01 : f32
    %169 = vector.broadcast %cst_70 : f32 to vector<8x128xf32>
    %170 = arith.addf %168, %169 : vector<8x128xf32>
    %171 = vector.extract_strided_slice %154 {offsets = [0, 256], sizes = [8, 128], strides = [1, 1]} : vector<8x512xf32> to vector<8x128xf32>
    %172 = math.tanh %171 : vector<8x128xf32>
    %173 = vector.extract_strided_slice %154 {offsets = [0, 384], sizes = [8, 128], strides = [1, 1]} : vector<8x512xf32> to vector<8x128xf32>
    %cst_71 = arith.constant 5.000000e-01 : f32
    %174 = vector.broadcast %cst_71 : f32 to vector<8x128xf32>
    %175 = arith.mulf %174, %173 : vector<8x128xf32>
    %176 = math.tanh %175 : vector<8x128xf32>
    %cst_72 = arith.constant 5.000000e-01 : f32
    %177 = vector.broadcast %cst_72 : f32 to vector<8x128xf32>
    %178 = arith.mulf %177, %176 : vector<8x128xf32>
    %cst_73 = arith.constant 5.000000e-01 : f32
    %179 = vector.broadcast %cst_73 : f32 to vector<8x128xf32>
    %180 = arith.addf %178, %179 : vector<8x128xf32>
    %181 = arith.mulf %170, %148 : vector<8x128xf32>
    %182 = arith.mulf %162, %172 : vector<8x128xf32>
    %183 = arith.addf %181, %182 : vector<8x128xf32>
    %184 = math.tanh %183 : vector<8x128xf32>
    %185 = arith.mulf %180, %184 : vector<8x128xf32>
    %c40 = arith.constant 40 : index
    %c0_74 = arith.constant 0 : index
    %186 = vector.load %arg7[%c40, %c0_74] : memref<64x512xf32, #tpu.memory_space<vmem>>, vector<8x512xf32>
    %c0_75 = arith.constant 0 : index
    %c0_76 = arith.constant 0 : index
    %187 = vector.load %arg2[%c0_75, %c0_76] : memref<128x512xf32, #tpu.memory_space<vmem>>, vector<128x512xf32>
    %cst_77 = arith.constant dense<0.000000e+00> : vector<8x512xf32>
    %188 = tpu.matmul %185, %187, %cst_77 {dimension_numbers = #tpu.dot_dimension_numbers<[1], [0], [0], [1], [0, 0, 1, 1], [], []>} : vector<8x128xf32>, vector<128x512xf32>, vector<8x512xf32> -> vector<8x512xf32>
    %189 = arith.addf %186, %188 : vector<8x512xf32>
    %190 = vector.extract_strided_slice %189 {offsets = [0, 0], sizes = [8, 128], strides = [1, 1]} : vector<8x512xf32> to vector<8x128xf32>
    %cst_78 = arith.constant 5.000000e-01 : f32
    %191 = vector.broadcast %cst_78 : f32 to vector<8x128xf32>
    %192 = arith.mulf %191, %190 : vector<8x128xf32>
    %193 = math.tanh %192 : vector<8x128xf32>
    %cst_79 = arith.constant 5.000000e-01 : f32
    %194 = vector.broadcast %cst_79 : f32 to vector<8x128xf32>
    %195 = arith.mulf %194, %193 : vector<8x128xf32>
    %cst_80 = arith.constant 5.000000e-01 : f32
    %196 = vector.broadcast %cst_80 : f32 to vector<8x128xf32>
    %197 = arith.addf %195, %196 : vector<8x128xf32>
    %198 = vector.extract_strided_slice %189 {offsets = [0, 128], sizes = [8, 128], strides = [1, 1]} : vector<8x512xf32> to vector<8x128xf32>
    %cst_81 = arith.constant 5.000000e-01 : f32
    %199 = vector.broadcast %cst_81 : f32 to vector<8x128xf32>
    %200 = arith.mulf %199, %198 : vector<8x128xf32>
    %201 = math.tanh %200 : vector<8x128xf32>
    %cst_82 = arith.constant 5.000000e-01 : f32
    %202 = vector.broadcast %cst_82 : f32 to vector<8x128xf32>
    %203 = arith.mulf %202, %201 : vector<8x128xf32>
    %cst_83 = arith.constant 5.000000e-01 : f32
    %204 = vector.broadcast %cst_83 : f32 to vector<8x128xf32>
    %205 = arith.addf %203, %204 : vector<8x128xf32>
    %206 = vector.extract_strided_slice %189 {offsets = [0, 256], sizes = [8, 128], strides = [1, 1]} : vector<8x512xf32> to vector<8x128xf32>
    %207 = math.tanh %206 : vector<8x128xf32>
    %208 = vector.extract_strided_slice %189 {offsets = [0, 384], sizes = [8, 128], strides = [1, 1]} : vector<8x512xf32> to vector<8x128xf32>
    %cst_84 = arith.constant 5.000000e-01 : f32
    %209 = vector.broadcast %cst_84 : f32 to vector<8x128xf32>
    %210 = arith.mulf %209, %208 : vector<8x128xf32>
    %211 = math.tanh %210 : vector<8x128xf32>
    %cst_85 = arith.constant 5.000000e-01 : f32
    %212 = vector.broadcast %cst_85 : f32 to vector<8x128xf32>
    %213 = arith.mulf %212, %211 : vector<8x128xf32>
    %cst_86 = arith.constant 5.000000e-01 : f32
    %214 = vector.broadcast %cst_86 : f32 to vector<8x128xf32>
    %215 = arith.addf %213, %214 : vector<8x128xf32>
    %216 = arith.mulf %205, %183 : vector<8x128xf32>
    %217 = arith.mulf %197, %207 : vector<8x128xf32>
    %218 = arith.addf %216, %217 : vector<8x128xf32>
    %219 = math.tanh %218 : vector<8x128xf32>
    %220 = arith.mulf %215, %219 : vector<8x128xf32>
    %c48 = arith.constant 48 : index
    %c0_87 = arith.constant 0 : index
    %221 = vector.load %arg7[%c48, %c0_87] : memref<64x512xf32, #tpu.memory_space<vmem>>, vector<8x512xf32>
    %c0_88 = arith.constant 0 : index
    %c0_89 = arith.constant 0 : index
    %222 = vector.load %arg2[%c0_88, %c0_89] : memref<128x512xf32, #tpu.memory_space<vmem>>, vector<128x512xf32>
    %cst_90 = arith.constant dense<0.000000e+00> : vector<8x512xf32>
    %223 = tpu.matmul %220, %222, %cst_90 {dimension_numbers = #tpu.dot_dimension_numbers<[1], [0], [0], [1], [0, 0, 1, 1], [], []>} : vector<8x128xf32>, vector<128x512xf32>, vector<8x512xf32> -> vector<8x512xf32>
    %224 = arith.addf %221, %223 : vector<8x512xf32>
    %225 = vector.extract_strided_slice %224 {offsets = [0, 0], sizes = [8, 128], strides = [1, 1]} : vector<8x512xf32> to vector<8x128xf32>
    %cst_91 = arith.constant 5.000000e-01 : f32
    %226 = vector.broadcast %cst_91 : f32 to vector<8x128xf32>
    %227 = arith.mulf %226, %225 : vector<8x128xf32>
    %228 = math.tanh %227 : vector<8x128xf32>
    %cst_92 = arith.constant 5.000000e-01 : f32
    %229 = vector.broadcast %cst_92 : f32 to vector<8x128xf32>
    %230 = arith.mulf %229, %228 : vector<8x128xf32>
    %cst_93 = arith.constant 5.000000e-01 : f32
    %231 = vector.broadcast %cst_93 : f32 to vector<8x128xf32>
    %232 = arith.addf %230, %231 : vector<8x128xf32>
    %233 = vector.extract_strided_slice %224 {offsets = [0, 128], sizes = [8, 128], strides = [1, 1]} : vector<8x512xf32> to vector<8x128xf32>
    %cst_94 = arith.constant 5.000000e-01 : f32
    %234 = vector.broadcast %cst_94 : f32 to vector<8x128xf32>
    %235 = arith.mulf %234, %233 : vector<8x128xf32>
    %236 = math.tanh %235 : vector<8x128xf32>
    %cst_95 = arith.constant 5.000000e-01 : f32
    %237 = vector.broadcast %cst_95 : f32 to vector<8x128xf32>
    %238 = arith.mulf %237, %236 : vector<8x128xf32>
    %cst_96 = arith.constant 5.000000e-01 : f32
    %239 = vector.broadcast %cst_96 : f32 to vector<8x128xf32>
    %240 = arith.addf %238, %239 : vector<8x128xf32>
    %241 = vector.extract_strided_slice %224 {offsets = [0, 256], sizes = [8, 128], strides = [1, 1]} : vector<8x512xf32> to vector<8x128xf32>
    %242 = math.tanh %241 : vector<8x128xf32>
    %243 = vector.extract_strided_slice %224 {offsets = [0, 384], sizes = [8, 128], strides = [1, 1]} : vector<8x512xf32> to vector<8x128xf32>
    %cst_97 = arith.constant 5.000000e-01 : f32
    %244 = vector.broadcast %cst_97 : f32 to vector<8x128xf32>
    %245 = arith.mulf %244, %243 : vector<8x128xf32>
    %246 = math.tanh %245 : vector<8x128xf32>
    %cst_98 = arith.constant 5.000000e-01 : f32
    %247 = vector.broadcast %cst_98 : f32 to vector<8x128xf32>
    %248 = arith.mulf %247, %246 : vector<8x128xf32>
    %cst_99 = arith.constant 5.000000e-01 : f32
    %249 = vector.broadcast %cst_99 : f32 to vector<8x128xf32>
    %250 = arith.addf %248, %249 : vector<8x128xf32>
    %251 = arith.mulf %240, %218 : vector<8x128xf32>
    %252 = arith.mulf %232, %242 : vector<8x128xf32>
    %253 = arith.addf %251, %252 : vector<8x128xf32>
    %254 = math.tanh %253 : vector<8x128xf32>
    %255 = arith.mulf %250, %254 : vector<8x128xf32>
    %c56 = arith.constant 56 : index
    %c0_100 = arith.constant 0 : index
    %256 = vector.load %arg7[%c56, %c0_100] : memref<64x512xf32, #tpu.memory_space<vmem>>, vector<8x512xf32>
    %c0_101 = arith.constant 0 : index
    %c0_102 = arith.constant 0 : index
    %257 = vector.load %arg2[%c0_101, %c0_102] : memref<128x512xf32, #tpu.memory_space<vmem>>, vector<128x512xf32>
    %cst_103 = arith.constant dense<0.000000e+00> : vector<8x512xf32>
    %258 = tpu.matmul %255, %257, %cst_103 {dimension_numbers = #tpu.dot_dimension_numbers<[1], [0], [0], [1], [0, 0, 1, 1], [], []>} : vector<8x128xf32>, vector<128x512xf32>, vector<8x512xf32> -> vector<8x512xf32>
    %259 = arith.addf %256, %258 : vector<8x512xf32>
    %260 = vector.extract_strided_slice %259 {offsets = [0, 0], sizes = [8, 128], strides = [1, 1]} : vector<8x512xf32> to vector<8x128xf32>
    %cst_104 = arith.constant 5.000000e-01 : f32
    %261 = vector.broadcast %cst_104 : f32 to vector<8x128xf32>
    %262 = arith.mulf %261, %260 : vector<8x128xf32>
    %263 = math.tanh %262 : vector<8x128xf32>
    %cst_105 = arith.constant 5.000000e-01 : f32
    %264 = vector.broadcast %cst_105 : f32 to vector<8x128xf32>
    %265 = arith.mulf %264, %263 : vector<8x128xf32>
    %cst_106 = arith.constant 5.000000e-01 : f32
    %266 = vector.broadcast %cst_106 : f32 to vector<8x128xf32>
    %267 = arith.addf %265, %266 : vector<8x128xf32>
    %268 = vector.extract_strided_slice %259 {offsets = [0, 128], sizes = [8, 128], strides = [1, 1]} : vector<8x512xf32> to vector<8x128xf32>
    %cst_107 = arith.constant 5.000000e-01 : f32
    %269 = vector.broadcast %cst_107 : f32 to vector<8x128xf32>
    %270 = arith.mulf %269, %268 : vector<8x128xf32>
    %271 = math.tanh %270 : vector<8x128xf32>
    %cst_108 = arith.constant 5.000000e-01 : f32
    %272 = vector.broadcast %cst_108 : f32 to vector<8x128xf32>
    %273 = arith.mulf %272, %271 : vector<8x128xf32>
    %cst_109 = arith.constant 5.000000e-01 : f32
    %274 = vector.broadcast %cst_109 : f32 to vector<8x128xf32>
    %275 = arith.addf %273, %274 : vector<8x128xf32>
    %276 = vector.extract_strided_slice %259 {offsets = [0, 256], sizes = [8, 128], strides = [1, 1]} : vector<8x512xf32> to vector<8x128xf32>
    %277 = math.tanh %276 : vector<8x128xf32>
    %278 = vector.extract_strided_slice %259 {offsets = [0, 384], sizes = [8, 128], strides = [1, 1]} : vector<8x512xf32> to vector<8x128xf32>
    %cst_110 = arith.constant 5.000000e-01 : f32
    %279 = vector.broadcast %cst_110 : f32 to vector<8x128xf32>
    %280 = arith.mulf %279, %278 : vector<8x128xf32>
    %281 = math.tanh %280 : vector<8x128xf32>
    %cst_111 = arith.constant 5.000000e-01 : f32
    %282 = vector.broadcast %cst_111 : f32 to vector<8x128xf32>
    %283 = arith.mulf %282, %281 : vector<8x128xf32>
    %cst_112 = arith.constant 5.000000e-01 : f32
    %284 = vector.broadcast %cst_112 : f32 to vector<8x128xf32>
    %285 = arith.addf %283, %284 : vector<8x128xf32>
    %286 = arith.mulf %275, %253 : vector<8x128xf32>
    %287 = arith.mulf %267, %277 : vector<8x128xf32>
    %288 = arith.addf %286, %287 : vector<8x128xf32>
    %289 = math.tanh %288 : vector<8x128xf32>
    %290 = arith.mulf %285, %289 : vector<8x128xf32>
    %c0_113 = arith.constant 0 : index
    %c0_114 = arith.constant 0 : index
    %291 = vector.load %arg4[%c0_113, %c0_114] : memref<1x128xf32, #tpu.memory_space<vmem>>, vector<1x128xf32>
    %292 = vector.broadcast %291 : vector<1x128xf32> to vector<8x128xf32>
    %293 = arith.mulf %290, %292 : vector<8x128xf32>
    %cst_115 = arith.constant dense<0.000000e+00> : vector<8xf32>
    %294 = vector.multi_reduction <add>, %293, %cst_115 [1] : vector<8x128xf32> to vector<8xf32>
    %295 = vector.shape_cast %294 : vector<8xf32> to vector<8x1xf32>
    %c0_116 = arith.constant 0 : index
    %c0_117 = arith.constant 0 : index
    %296 = vector.load %arg5[%c0_116, %c0_117] : memref<1x1xf32, #tpu.memory_space<vmem>>, vector<1x1xf32>
    %297 = vector.broadcast %296 : vector<1x1xf32> to vector<8x1xf32>
    %298 = arith.addf %295, %297 : vector<8x1xf32>
    %c0_118 = arith.constant 0 : index
    %c0_119 = arith.constant 0 : index
    %299 = vector.load %arg6[%c0_118, %c0_119] : memref<8x1xf32, #tpu.memory_space<vmem>>, vector<8x1xf32>
    tpu.vector_store %arg6[%c0_118, %c0_119], %298 {strides = array<i32>} : memref<8x1xf32, #tpu.memory_space<vmem>>, vector<8x1xf32>,
    return
  }
}

</mosaic_0001>

<bundles_post_ra>
// kernel: tpu_custom_call.1
= control target key start
LH: loop header
LB: loop body
LE: loop exit
PB: predicated region body
PF: predicated region fallthrough
CT: control target
= control target key end

     0   :  { %s2807_s0 = inlined_call_operand.vmem [shape: f32[64,1], index: 0, kind: input, shape index: {}]   ;;  %s2808_s1 = inlined_call_operand.vmem [shape: f32[1,512], index: 1, kind: input, shape index: {}]   ;;  %s2809_s2 = inlined_call_operand.hbm [shape: f32[128,512], index: 2, kind: input, shape index: {}]   ;;  %s2810_s3 = inlined_call_operand.vmem [shape: f32[1,512], index: 3, kind: input, shape index: {}]   ;;  %s2811_s4 = inlined_call_operand.vmem [shape: f32[1,128], index: 4, kind: input, shape index: {}]   ;;  %s2812_s5 = inlined_call_operand.<no memory space> [shape: f32[1,1], index: 5, kind: input, shape index: {}]   ;;  %s2813_s6 = inlined_call_operand.vmem [shape: f32[8,1], index: 6, kind: output, shape index: {}]  }
   0x1   :  { %v11_v0 = vstv %s2812_s5 }
   0x2   :  { %12 = vst [vmem:[#allocation3] sm:$0x1] %v11_v0 }
   0x3   :  { %13 = vsyncpa [#allocation5], 0  ;;  %s1835_s23 = smov [#allocation4]  }
   0x4   :  { %s23_s24 = sshll.u32 %s1835_s23, 4  ;;  %s24_s24 = int_to_ptr.vmem [resolvable:$true] %s23_s24 }
   0x5   :  { %s1821_s25 = scalar_lea.vmem %s24_s24, 8192  ;;  %p1826_p1 = scmp.lt.s32.totalorder %s24_s24, %s24_s24 }
   0x6   :  { %p1822_p0 = scmp.ne.s32.totalorder %s24_s24, %s1821_s25  ;;  %p1827_p2 = scmp.lt.s32.totalorder %s1821_s25, %s1821_s25 }
   0x8   :  { %p1828_p3 = por %p1827_p2, %p1826_p1 }
   0xa   :  { %p1829_p4 = pnand %p1828_p3, %p1822_p0 }
   0xc   :  { %1832 = shalt.err (!%p1829_p4)
}
   0xd   :  { %s1836_s26 = smov 512   ;;  %s1837_s27 = smov 32  }
   0xe   :  { %29 = dma.hbm_to_vmem [thread:$0]  %s2809_s2, 8192, %s24_s24, [#allocation5], %s1836_s26, %s1836_s26, %s1837_s27  }
   0xf   :  { %1833 = dma.done.wait [#allocation5], 8192  }
  0x10   :  { %1834 = vsyncadd [#allocation5], 4294959104  ;;  %v2814_v1 = vmov 0.0   ;;  %v1839_v2 = vmov 0   ;;  %v1883_v3 = vld [vmem:[#allocation4 + $0x1e8] sm:$0xff]  ;;  %v1885_v4 = vld [vmem:[#allocation4 + $0x1f8] sm:$0xff] }
  0x11   :  { %359 = vmatprep.mubr.f32.mxu0 %v2814_v1  ;;  %430 = vmatprep.mubr.f32.mxu1 %v2814_v1  ;;  %2930 = vst [vmem:[#allocation7_spill] sm:$0xff] %v1883_v3  ;;  %2931 = vst [vmem:[#allocation8_spill] sm:$0xff] %v1885_v4  ;;  %v1887_v5 = vld [vmem:[#allocation4 + $0x1e0] sm:$0xff]  ;;  %v1891_v6 = vld [vmem:[#allocation4 + $0x1f0] sm:$0xff]  ;;  %vm1653_vm0 = vcmask 7168  }
  0x12   :  { %1667 = vset.pattern.permute.xlu0 %v1839_v2  ;;  %1668 = vset.pattern.permute.xlu1 %v1839_v2  ;;  %v1893_v7 = vld [vmem:[#allocation4 + $0x1c8] sm:$0xff]  ;;  %v1895_v8 = vld [vmem:[#allocation4 + $0x1d8] sm:$0xff]  ;;  %v1899_v9 = vld [vmem:[#allocation4 + $0x1c0] sm:$0xff] }
  0x13   :  { %295 = vmatprep.subr.mxu0 %v1883_v3  ;;  %366 = vmatprep.subr.mxu1 %v1885_v4  ;;  %v1901_v10 = vld [vmem:[#allocation4 + $0x1d0] sm:$0xff]  ;;  %v1903_v11 = vld [vmem:[#allocation4 + $0x1a8] sm:$0xff]  ;;  %v1907_v12 = vld [vmem:[#allocation4 + $0x1b8] sm:$0xff] }
  0x14   :  { %296 = vmatpush1.msra.mxu0 %v1887_v5  ;;  %367 = vmatpush1.msra.mxu1 %v1891_v6  ;;  %v1909_v13 = vld [vmem:[#allocation4 + $0x1a0] sm:$0xff]  ;;  %v1911_v14 = vld [vmem:[#allocation4 + $0x1b0] sm:$0xff]  ;;  %v1915_v15 = vld [vmem:[#allocation4 + $0x188] sm:$0xff] }
  0x15   :  { %297 = vmatprep.subr.mxu0 %v1893_v7  ;;  %368 = vmatprep.subr.mxu1 %v1895_v8  ;;  %v1917_v16 = vld [vmem:[#allocation4 + $0x198] sm:$0xff]  ;;  %v1921_v17 = vld [vmem:[#allocation4 + $0x180] sm:$0xff]  ;;  %v1923_v18 = vld [vmem:[#allocation4 + $0x190] sm:$0xff] }
  0x16   :  { %298 = vmatpush1.msra.mxu0 %v1899_v9  ;;  %369 = vmatpush1.msra.mxu1 %v1901_v10  ;;  %v1927_v19 = vld [vmem:[#allocation4 + $0x168] sm:$0xff]  ;;  %v1929_v20 = vld [vmem:[#allocation4 + $0x178] sm:$0xff]  ;;  %v1933_v21 = vld [vmem:[#allocation4 + $0x160] sm:$0xff] }
  0x17   :  { %299 = vmatprep.subr.mxu0 %v1903_v11  ;;  %370 = vmatprep.subr.mxu1 %v1907_v12  ;;  %v1935_v22 = vld [vmem:[#allocation4 + $0x170] sm:$0xff]  ;;  %v1939_v23 = vld [vmem:[#allocation4 + $0x148] sm:$0xff]  ;;  %v1941_v24 = vld [vmem:[#allocation4 + $0x158] sm:$0xff] }
  0x18   :  { %300 = vmatpush1.msra.mxu0 %v1909_v13  ;;  %371 = vmatpush1.msra.mxu1 %v1911_v14  ;;  %v1945_v25 = vld [vmem:[#allocation4 + $0x140] sm:$0xff]  ;;  %v1947_v26 = vld [vmem:[#allocation4 + $0x150] sm:$0xff]  ;;  %v1951_v27 = vld [vmem:[#allocation4 + $0x128] sm:$0xff] }
  0x19   :  { %301 = vmatprep.subr.mxu0 %v1915_v15  ;;  %372 = vmatprep.subr.mxu1 %v1917_v16  ;;  %v1953_v28 = vld [vmem:[#allocation4 + $0x138] sm:$0xff]  ;;  %v1957_v29 = vld [vmem:[#allocation4 + $0x120] sm:$0xff]  ;;  %v1959_v30 = vld [vmem:[#allocation4 + $0x130] sm:$0xff] }
  0x1a   :  { %302 = vmatpush1.msra.mxu0 %v1921_v17  ;;  %373 = vmatpush1.msra.mxu1 %v1923_v18  ;;  %v1963_v31 = vld [vmem:[#allocation4 + $0x108] sm:$0xff]  ;;  %v1965_v32 = vld [vmem:[#allocation4 + $0x118] sm:$0xff]  ;;  %v1969_v33 = vld [vmem:[#allocation4 + $0x100] sm:$0xff] }
  0x1b   :  { %303 = vmatprep.subr.mxu0 %v1927_v19  ;;  %374 = vmatprep.subr.mxu1 %v1929_v20  ;;  %v1971_v34 = vld [vmem:[#allocation4 + $0x110] sm:$0xff]  ;;  %v1975_v35 = vld [vmem:[#allocation4 + $0xe8] sm:$0xff]  ;;  %v1977_v36 = vld [vmem:[#allocation4 + $0xf8] sm:$0xff] }
  0x1c   :  { %304 = vmatpush1.msra.mxu0 %v1933_v21  ;;  %375 = vmatpush1.msra.mxu1 %v1935_v22  ;;  %v1981_v37 = vld [vmem:[#allocation4 + $0xe0] sm:$0xff]  ;;  %v1983_v38 = vld [vmem:[#allocation4 + $0xf0] sm:$0xff]  ;;  %v1987_v39 = vld [vmem:[#allocation4 + $0xc8] sm:$0xff] }
  0x1d   :  { %305 = vmatprep.subr.mxu0 %v1939_v23  ;;  %376 = vmatprep.subr.mxu1 %v1941_v24  ;;  %v1989_v40 = vld [vmem:[#allocation4 + $0xd8] sm:$0xff]  ;;  %v1993_v41 = vld [vmem:[#allocation4 + $0xc0] sm:$0xff]  ;;  %v1995_v42 = vld [vmem:[#allocation4 + $0xd0] sm:$0xff] }
  0x1e   :  { %306 = vmatpush1.msra.mxu0 %v1945_v25  ;;  %377 = vmatpush1.msra.mxu1 %v1947_v26  ;;  %v1999_v43 = vld [vmem:[#allocation4 + $0xa8] sm:$0xff]  ;;  %v2001_v44 = vld [vmem:[#allocation4 + $0xb8] sm:$0xff]  ;;  %v2005_v45 = vld [vmem:[#allocation4 + $0xa0] sm:$0xff] }
  0x1f   :  { %307 = vmatprep.subr.mxu0 %v1951_v27  ;;  %378 = vmatprep.subr.mxu1 %v1953_v28  ;;  %2932 = vst [vmem:[#allocation9_spill] sm:$0xff] %v2005_v45  ;;  %v2007_v46 = vld [vmem:[#allocation4 + $0xb0] sm:$0xff]  ;;  %v2011_v47 = vld [vmem:[#allocation4 + $0x88] sm:$0xff]  ;;  %v2013_v48 = vld [vmem:[#allocation4 + $0x98] sm:$0xff] }
  0x20   :  { %308 = vmatpush1.msra.mxu0 %v1957_v29  ;;  %379 = vmatpush1.msra.mxu1 %v1959_v30  ;;  %2933 = vst [vmem:[#allocation10_spill] sm:$0xff] %v2007_v46  ;;  %2934 = vst [vmem:[#allocation11_spill] sm:$0xff] %v2011_v47  ;;  %v2017_v49 = vld [vmem:[#allocation4 + $0x80] sm:$0xff]  ;;  %v2019_v50 = vld [vmem:[#allocation4 + $0x90] sm:$0xff] }
  0x21   :  { %309 = vmatprep.subr.mxu0 %v1963_v31  ;;  %380 = vmatprep.subr.mxu1 %v1965_v32  ;;  %2935 = vst [vmem:[#allocation12_spill] sm:$0xff] %v2013_v48  ;;  %2936 = vst [vmem:[#allocation13_spill] sm:$0xff] %v2017_v49  ;;  %v2023_v51 = vld [vmem:[#allocation4 + $0x68] sm:$0xff]  ;;  %v2025_v52 = vld [vmem:[#allocation4 + $0x78] sm:$0xff] }
  0x22   :  { %310 = vmatpush1.msra.mxu0 %v1969_v33  ;;  %381 = vmatpush1.msra.mxu1 %v1971_v34  ;;  %2937 = vst [vmem:[#allocation14_spill] sm:$0xff] %v2019_v50  ;;  %2938 = vst [vmem:[#allocation15_spill] sm:$0xff] %v2023_v51  ;;  %v2029_v53 = vld [vmem:[#allocation4 + $0x60] sm:$0xff]  ;;  %v2031_v54 = vld [vmem:[#allocation4 + $0x70] sm:$0xff] }
  0x23   :  { %311 = vmatprep.subr.mxu0 %v1975_v35  ;;  %382 = vmatprep.subr.mxu1 %v1977_v36  ;;  %2939 = vst [vmem:[#allocation16_spill] sm:$0xff] %v2025_v52  ;;  %2940 = vst [vmem:[#allocation17_spill] sm:$0xff] %v2029_v53  ;;  %v2035_v55 = vld [vmem:[#allocation4 + $0x48] sm:$0xff]  ;;  %v2037_v56 = vld [vmem:[#allocation4 + $0x58] sm:$0xff] }
  0x24   :  { %312 = vmatpush1.msra.mxu0 %v1981_v37  ;;  %383 = vmatpush1.msra.mxu1 %v1983_v38  ;;  %2941 = vst [vmem:[#allocation18_spill] sm:$0xff] %v2031_v54  ;;  %2942 = vst [vmem:[#allocation19_spill] sm:$0xff] %v2035_v55  ;;  %v2041_v57 = vld [vmem:[#allocation4 + $0x40] sm:$0xff]  ;;  %v2043_v58 = vld [vmem:[#allocation4 + $0x50] sm:$0xff] }
  0x25   :  { %313 = vmatprep.subr.mxu0 %v1987_v39  ;;  %384 = vmatprep.subr.mxu1 %v1989_v40  ;;  %2943 = vst [vmem:[#allocation20_spill] sm:$0xff] %v2037_v56  ;;  %2944 = vst [vmem:[#allocation21_spill] sm:$0xff] %v2041_v57  ;;  %v2047_v59 = vld [vmem:[#allocation4 + $0x28] sm:$0xff]  ;;  %v2049_v60 = vld [vmem:[#allocation4 + $0x38] sm:$0xff] }
  0x26   :  { %314 = vmatpush1.msra.mxu0 %v1993_v41  ;;  %385 = vmatpush1.msra.mxu1 %v1995_v42  ;;  %2945 = vst [vmem:[#allocation22_spill] sm:$0xff] %v2043_v58  ;;  %2946 = vst [vmem:[#allocation23_spill] sm:$0xff] %v2047_v59  ;;  %v2053_v61 = vld [vmem:[#allocation4 + $0x20] sm:$0xff]  ;;  %v2055_v62 = vld [vmem:[#allocation4 + $0x30] sm:$0xff] }
  0x27   :  { %315 = vmatprep.subr.mxu0 %v1999_v43  ;;  %386 = vmatprep.subr.mxu1 %v2001_v44  ;;  %2947 = vst [vmem:[#allocation24_spill] sm:$0xff] %v2049_v60  ;;  %2948 = vst [vmem:[#allocation25_spill] sm:$0xff] %v2053_v61  ;;  %v2059_v63 = vld [vmem:[#allocation4 + $0x8] sm:$0xff]  ;;  %v2061_v0 = vld [vmem:[#allocation4 + $0x18] sm:$0xff] }
  0x28   :  { %316 = vmatpush1.msra.mxu0 %v2005_v45  ;;  %387 = vmatpush1.msra.mxu1 %v2007_v46  ;;  %2949 = vst [vmem:[#allocation26_spill] sm:$0xff] %v2055_v62  ;;  %2950 = vst [vmem:[#allocation27_spill] sm:$0xff] %v2059_v63  ;;  %v2065_v2 = vld [vmem:[#allocation4] sm:$0xff]  ;;  %v2067_v1 = vld [vmem:[#allocation4 + $0x10] sm:$0xff] }
  0x29   :  { %317 = vmatprep.subr.mxu0 %v2011_v47  ;;  %388 = vmatprep.subr.mxu1 %v2013_v48  ;;  %2951 = vst [vmem:[#allocation28_spill] sm:$0xff] %v2061_v0  ;;  %2952 = vst [vmem:[#allocation29_spill] sm:$0xff] %v2065_v2 }
  0x2a   :  { %318 = vmatpush1.msra.mxu0 %v2017_v49  ;;  %389 = vmatpush1.msra.mxu1 %v2019_v50  ;;  %2953 = vst [vmem:[#allocation30_spill] sm:$0xff] %v2067_v1 }
  0x2b   :  { %319 = vmatprep.subr.mxu0 %v2023_v51  ;;  %390 = vmatprep.subr.mxu1 %v2025_v52 }
  0x2c   :  { %320 = vmatpush1.msra.mxu0 %v2029_v53  ;;  %391 = vmatpush1.msra.mxu1 %v2031_v54 }
  0x2d   :  { %321 = vmatprep.subr.mxu0 %v2035_v55  ;;  %392 = vmatprep.subr.mxu1 %v2037_v56 }
  0x2e   :  { %322 = vmatpush1.msra.mxu0 %v2041_v57  ;;  %393 = vmatpush1.msra.mxu1 %v2043_v58  ;;  %v39_v58 = vld [vmem:[%s2807_s0] sm:$0xff] }
  0x2f   :  { %323 = vmatprep.subr.mxu0 %v2047_v59  ;;  %394 = vmatprep.subr.mxu1 %v2049_v60  ;;  %v2954_v60 = vmov 0.0  }
  0x30   :  { %324 = vmatpush1.msra.mxu0 %v2053_v61  ;;  %395 = vmatpush1.msra.mxu1 %v2055_v62 }
  0x31   :  { %325 = vmatprep.subr.mxu0 %v2059_v63  ;;  %396 = vmatprep.subr.mxu1 %v2061_v0  ;;  %v40_v63 = vld [vmem:[%s2807_s0 + $0x8] sm:$0xff] }
  0x32   :  { %326 = vmatpush1.msra.mxu0 %v2065_v2  ;;  %397 = vmatpush1.msra.mxu1 %v2067_v1 }
  0x33   :  { %360 = vmatmul.mubr.f32.vlgmr.msra.gmra.mxu0 %v2954_v60  ;;  %431 = vmatmul.mubr.f32.vlgmr.msra.gmra.mxu1 %v2954_v60 }
  0x34   :  { %50 = vperm.xlu0 %1667, %v39_v58   ;;  %463 = vmatprep.subr.mxu0 %v1883_v3  ;;  %v43_v58 = vld [vmem:[%s2807_s0 + $0x20] sm:$0xff] }
  0x35   :  { %534 = vmatprep.subr.mxu1 %v1885_v4  ;;  %464 = vmatpush1.msra.mxu0 %v1887_v5 }
  0x36   :  { %535 = vmatpush1.msra.mxu1 %v1891_v6  ;;  %465 = vmatprep.subr.mxu0 %v1893_v7 }
  0x37   :  { %536 = vmatprep.subr.mxu1 %v1895_v8  ;;  %466 = vmatpush1.msra.mxu0 %v1899_v9 }
  0x38   :  { %55 = vperm.xlu0 %1667, %v40_v63   ;;  %537 = vmatpush1.msra.mxu1 %v1901_v10  ;;  %v45_v63 = vld [vmem:[%s2807_s0 + $0x30] sm:$0xff] }
  0x39   :  { %467 = vmatprep.subr.mxu0 %v1903_v11  ;;  %538 = vmatprep.subr.mxu1 %v1907_v12 }
  0x3a   :  { %468 = vmatpush1.msra.mxu0 %v1909_v13  ;;  %539 = vmatpush1.msra.mxu1 %v1911_v14 }
  0x3b   :  { %469 = vmatprep.subr.mxu0 %v1915_v15  ;;  %540 = vmatprep.subr.mxu1 %v1917_v16 }
  0x3c   :  { %70 = vperm.xlu0 %1667, %v43_v58   ;;  %470 = vmatpush1.msra.mxu0 %v1921_v17  ;;  %v2955_v58 = vld [vmem:[#allocation22_spill] sm:$0xff] }
  0x3d   :  { %541 = vmatpush1.msra.mxu1 %v1923_v18  ;;  %471 = vmatprep.subr.mxu0 %v1927_v19 }
  0x3e   :  { %542 = vmatprep.subr.mxu1 %v1929_v20  ;;  %472 = vmatpush1.msra.mxu0 %v1933_v21 }
  0x3f   :  { %543 = vmatpush1.msra.mxu1 %v1935_v22  ;;  %473 = vmatprep.subr.mxu0 %v1939_v23 }
  0x40   :  { %80 = vperm.xlu0 %1667, %v45_v63   ;;  %544 = vmatprep.subr.mxu1 %v1941_v24  ;;  %v2956_v63 = vld [vmem:[#allocation24_spill] sm:$0xff] }
  0x41   :  { %474 = vmatpush1.msra.mxu0 %v1945_v25  ;;  %545 = vmatpush1.msra.mxu1 %v1947_v26 }
  0x42   :  { %475 = vmatprep.subr.mxu0 %v1951_v27  ;;  %546 = vmatprep.subr.mxu1 %v1953_v28 }
  0x43   :  { %476 = vmatpush1.msra.mxu0 %v1957_v29  ;;  %547 = vmatpush1.msra.mxu1 %v1959_v30 }
  0x44   :  { %477 = vmatprep.subr.mxu0 %v1963_v31  ;;  %548 = vmatprep.subr.mxu1 %v1965_v32 }
  0x45   :  { %478 = vmatpush1.msra.mxu0 %v1969_v33  ;;  %549 = vmatpush1.msra.mxu1 %v1971_v34 }
  0x46   :  { %479 = vmatprep.subr.mxu0 %v1975_v35  ;;  %550 = vmatprep.subr.mxu1 %v1977_v36 }
  0x47   :  { %480 = vmatpush1.msra.mxu0 %v1981_v37  ;;  %551 = vmatpush1.msra.mxu1 %v1983_v38 }
  0x48   :  { %481 = vmatprep.subr.mxu0 %v1987_v39  ;;  %552 = vmatprep.subr.mxu1 %v1989_v40 }
  0x49   :  { %482 = vmatpush1.msra.mxu0 %v1993_v41  ;;  %553 = vmatpush1.msra.mxu1 %v1995_v42 }
  0x4a   :  { %483 = vmatprep.subr.mxu0 %v1999_v43  ;;  %554 = vmatprep.subr.mxu1 %v2001_v44 }
  0x4b   :  { %484 = vmatpush1.msra.mxu0 %v2005_v45  ;;  %555 = vmatpush1.msra.mxu1 %v2007_v46 }
  0x4c   :  { %485 = vmatprep.subr.mxu0 %v2011_v47  ;;  %556 = vmatprep.subr.mxu1 %v2013_v48 }
  0x4d   :  { %486 = vmatpush1.msra.mxu0 %v2017_v49  ;;  %557 = vmatpush1.msra.mxu1 %v2019_v50 }
  0x4e   :  { %487 = vmatprep.subr.mxu0 %v2023_v51  ;;  %558 = vmatprep.subr.mxu1 %v2025_v52  ;;  %v2957_v52 = vld [vmem:[#allocation27_spill] sm:$0xff] }
  0x4f   :  { %488 = vmatpush1.msra.mxu0 %v2029_v53  ;;  %559 = vmatpush1.msra.mxu1 %v2031_v54 }
  0x50   :  { %489 = vmatprep.subr.mxu0 %v2035_v55  ;;  %560 = vmatprep.subr.mxu1 %v2037_v56 }
  0x51   :  { %490 = vmatpush1.msra.mxu0 %v2041_v57  ;;  %561 = vmatpush1.msra.mxu1 %v2955_v58 }
  0x52   :  { %491 = vmatprep.subr.mxu0 %v2047_v59  ;;  %562 = vmatprep.subr.mxu1 %v2956_v63  ;;  %v89_v63 = vlaneseq }
  0x53   :  { %492 = vmatpush1.msra.mxu0 %v2053_v61  ;;  %563 = vmatpush1.msra.mxu1 %v2055_v62 }
  0x54   :  { %493 = vmatprep.subr.mxu0 %v2957_v52  ;;  %564 = vmatprep.subr.mxu1 %v2061_v0  ;;  %v90_v61 = vshrl.u32 %v89_v63, 7  ;;  %v47_v52 = vld [vmem:[%s2808_s1] sm:$0xf] }
  0x55   :  { %494 = vmatpush1.msra.mxu0 %v2065_v2  ;;  %527 = vmatprep.mubr.f32.mxu0 %v2954_v60 }
  0x56   :  { %565 = vmatpush1.msra.mxu1 %v2067_v1  ;;  %598 = vmatprep.mubr.f32.mxu1 %v2954_v60  ;;  %v91_v59 = vsub.s32 0, %v90_v61  ;;  %v95_v0 = vsub.s32 1, %v90_v61  ;;  %v141_v1 = vld [vmem:[%s2810_s3] sm:$0xf]  ;;  %v99_v2 = vsub.s32 2, %v90_v61  ;;  %v103_v54 = vsub.s32 3, %v90_v61 }
  0x57   :  { %631 = vmatprep.subr.mxu0 %v1883_v3  ;;  %702 = vmatprep.subr.mxu1 %v1885_v4 }
  0x58   :  { %v2160_v62 = vrot.slane %v47_v52, %v91_v59  ;;  %v2165_v60 = vrot.slane %v47_v52, %v95_v0  ;;  %v2168_v58 = vrot.slane %v141_v1, %v91_v59  ;;  %v2170_v63 = vrot.slane %v47_v52, %v99_v2 }
  0x59   :  { %v2173_v56 = vrot.slane %v141_v1, %v95_v0  ;;  %v2177_v51 = vrot.slane %v141_v1, %v99_v2  ;;  %v2184_v61 = vrot.slane %v141_v1, %v103_v54 }
  0x5a   :  { %2958 = vst [vmem:[#allocation31_spill] sm:$0xff] %v2160_v62  ;;  %2959 = vst [vmem:[#allocation32_spill] sm:$0xff] %v2165_v60 }
  0x5b   :  { %2960 = vst [vmem:[#allocation33_spill] sm:$0xff] %v2168_v58  ;;  %2961 = vst [vmem:[#allocation34_spill] sm:$0xff] %v2170_v63 }
  0x5c   :  { %2962 = vst [vmem:[#allocation35_spill] sm:$0xff] %v2173_v56 }
  0xaf   :  { %v51_v3 = vpop.permute.xlu0 %50 }
  0xb0   :  { %v109_v4 = vmul.f32 %v2160_v62, %v51_v3  ;;  %v110_v57 = vmul.f32 %v2165_v60, %v51_v3  ;;  %v111_v53 = vmul.f32 %v2170_v63, %v51_v3  ;;  %v2180_v62 = vrot.slane %v47_v52, %v103_v54 }
  0xb2   :  { %v163_v55 = vadd.f32 %v2168_v58, %v109_v4  ;;  %v164_v50 = vadd.f32 %v2173_v56, %v110_v57  ;;  %v165_v46 = vadd.f32 %v2177_v51, %v111_v53  ;;  %v112_v4 = vmul.f32 %v2180_v62, %v51_v3 }
  0xb4   :  { %v166_v57 = vadd.f32 %v2184_v61, %v112_v4  ;;  %v2964_v4 = vld [vmem:[#allocation11_spill] sm:$0xff] }
  0xf3   :  { %v361_v49 = vpop.f32.mrf.mxu0  ;;  %v432_v63 = vpop.f32.mrf.mxu1 }
  0xf4   :  { %v437_v48 = vadd.f32 %v361_v49, %v163_v55  ;;  %v439_v2 = vadd.f32 %v432_v63, %v165_v46 }
  0xf5   :  { %v363_v59 = vpop.f32.mrf.mxu0  ;;  %v434_v56 = vpop.f32.mrf.mxu1 }
  0xf6   :  { %v441_v47 = vmul.f32 0.5, %v437_v48  ;;  %v438_v60 = vadd.f32 %v363_v59, %v164_v50  ;;  %v440_v49 = vadd.f32 %v434_v56, %v166_v57  ;;  %v2966_v57 = vld [vmem:[#allocation13_spill] sm:$0xff] }
  0xf8   :  { %1669 = vtanh.f32 %v441_v47  ;;  %v445_v0 = vmul.f32 0.5, %v438_v60  ;;  %v450_v52 = vmul.f32 0.5, %v440_v49  ;;  %v2967_v49 = vld [vmem:[#allocation14_spill] sm:$0xff] }
  0xfa   :  { %1671 = vtanh.f32 %v445_v0 }
  0xfb   :  { %1673 = vtanh.f32 %v439_v2  ;;  %v2965_v2 = vld [vmem:[#allocation12_spill] sm:$0xff] }
  0xfc   :  { %1675 = vtanh.f32 %v450_v52  ;;  %v2968_v52 = vld [vmem:[#allocation15_spill] sm:$0xff] }
 0x105   :  { %v1670_v55 = vpop.eup %1669 }
 0x106   :  { %v443_v48 = vmul.f32 0.5, %v1670_v55  ;;  %v2969_v55 = vld [vmem:[#allocation16_spill] sm:$0xff] }
 0x107   :  { %v1672_v58 = vpop.eup %1671 }
 0x108   :  { %v444_v53 = vadd.f32 0.5, %v443_v48  ;;  %v447_v50 = vmul.f32 0.5, %v1672_v58  ;;  %v1674_v60 = vpop.eup %1673  ;;  %v2963_v58 = vld [vmem:[#allocation10_spill] sm:$0xff]  ;;  %v2970_v48 = vld [vmem:[#allocation17_spill] sm:$0xff] }
 0x109   :  { %v1676_v46 = vpop.eup %1675 }
 0x10a   :  { %v448_v47 = vadd.f32 0.5, %v447_v50  ;;  %v455_v1 = vmul.f32 %v1674_v60, %v444_v53  ;;  %v452_v63 = vmul.f32 0.5, %v1676_v46  ;;  %v2971_v53 = vld [vmem:[#allocation18_spill] sm:$0xff]  ;;  %v2972_v50 = vld [vmem:[#allocation19_spill] sm:$0xff]  ;;  %v2974_v60 = vld [vmem:[#allocation21_spill] sm:$0xff] }
 0x10b   :  { %v2977_v46 = vld [vmem:[#allocation24_spill] sm:$0xff] }
 0x10c   :  { %v454_v3 = vmul.f32 0.0, %v448_v47  ;;  %v453_v59 = vadd.f32 0.5, %v452_v63  ;;  %v2973_v47 = vld [vmem:[#allocation20_spill] sm:$0xff]  ;;  %v2978_v63 = vld [vmem:[#allocation25_spill] sm:$0xff] }
 0x10e   :  { %v2187_v54 = vadd.f32 %v455_v1, %v454_v3  ;;  %v2975_v3 = vld [vmem:[#allocation22_spill] sm:$0xff]  ;;  %v2976_v1 = vld [vmem:[#allocation23_spill] sm:$0xff] }
 0x110   :  { %1677 = vtanh.f32 %v2187_v54 }
 0x11d   :  { %v1678_v0 = vpop.eup %1677 }
 0x11e   :  { %v458_v56 = vmul.f32 %v1678_v0, %v453_v59  ;;  %v2979_v59 = vld [vmem:[#allocation26_spill] sm:$0xff]  ;;  %v2980_v0 = vld [vmem:[#allocation27_spill] sm:$0xff] }
 0x120   :  { %528 = vmatmul.mubr.f32.vlgmr.msra.gmra.mxu0 %v458_v56  ;;  %599 = vmatmul.mubr.f32.vlgmr.msra.gmra.mxu1 %v458_v56  ;;  %v2981_v56 = vld [vmem:[#allocation28_spill] sm:$0xff] }
 0x121   :  { %632 = vmatpush1.msra.mxu0 %v1887_v5  ;;  %703 = vmatpush1.msra.mxu1 %v1891_v6 }
 0x122   :  { %633 = vmatprep.subr.mxu0 %v1893_v7  ;;  %704 = vmatprep.subr.mxu1 %v1895_v8 }
 0x123   :  { %634 = vmatpush1.msra.mxu0 %v1899_v9  ;;  %705 = vmatpush1.msra.mxu1 %v1901_v10 }
 0x124   :  { %635 = vmatprep.subr.mxu0 %v1903_v11  ;;  %706 = vmatprep.subr.mxu1 %v1907_v12 }
 0x125   :  { %636 = vmatpush1.msra.mxu0 %v1909_v13  ;;  %707 = vmatpush1.msra.mxu1 %v1911_v14 }
 0x126   :  { %637 = vmatprep.subr.mxu0 %v1915_v15  ;;  %708 = vmatprep.subr.mxu1 %v1917_v16 }
 0x127   :  { %638 = vmatpush1.msra.mxu0 %v1921_v17  ;;  %709 = vmatpush1.msra.mxu1 %v1923_v18 }
 0x128   :  { %639 = vmatprep.subr.mxu0 %v1927_v19  ;;  %710 = vmatprep.subr.mxu1 %v1929_v20 }
 0x129   :  { %640 = vmatpush1.msra.mxu0 %v1933_v21  ;;  %711 = vmatpush1.msra.mxu1 %v1935_v22 }
 0x12a   :  { %641 = vmatprep.subr.mxu0 %v1939_v23  ;;  %712 = vmatprep.subr.mxu1 %v1941_v24 }
 0x12b   :  { %642 = vmatpush1.msra.mxu0 %v1945_v25  ;;  %713 = vmatpush1.msra.mxu1 %v1947_v26 }
 0x12c   :  { %643 = vmatprep.subr.mxu0 %v1951_v27  ;;  %714 = vmatprep.subr.mxu1 %v1953_v28 }
 0x12d   :  { %644 = vmatpush1.msra.mxu0 %v1957_v29  ;;  %715 = vmatpush1.msra.mxu1 %v1959_v30 }
 0x12e   :  { %645 = vmatprep.subr.mxu0 %v1963_v31  ;;  %716 = vmatprep.subr.mxu1 %v1965_v32 }
 0x12f   :  { %646 = vmatpush1.msra.mxu0 %v1969_v33  ;;  %717 = vmatpush1.msra.mxu1 %v1971_v34 }
 0x130   :  { %647 = vmatprep.subr.mxu0 %v1975_v35  ;;  %718 = vmatprep.subr.mxu1 %v1977_v36 }
 0x131   :  { %648 = vmatpush1.msra.mxu0 %v1981_v37  ;;  %719 = vmatpush1.msra.mxu1 %v1983_v38 }
 0x132   :  { %649 = vmatprep.subr.mxu0 %v1987_v39  ;;  %720 = vmatprep.subr.mxu1 %v1989_v40 }
 0x133   :  { %650 = vmatpush1.msra.mxu0 %v1993_v41  ;;  %721 = vmatpush1.msra.mxu1 %v1995_v42 }
 0x134   :  { %651 = vmatprep.subr.mxu0 %v1999_v43  ;;  %722 = vmatprep.subr.mxu1 %v2001_v44 }
 0x135   :  { %652 = vmatpush1.msra.mxu0 %v2005_v45  ;;  %723 = vmatpush1.msra.mxu1 %v2963_v58 }
 0x136   :  { %653 = vmatprep.subr.mxu0 %v2964_v4  ;;  %724 = vmatprep.subr.mxu1 %v2965_v2 }
 0x137   :  { %654 = vmatpush1.msra.mxu0 %v2966_v57  ;;  %725 = vmatpush1.msra.mxu1 %v2967_v49 }
 0x138   :  { %655 = vmatprep.subr.mxu0 %v2968_v52  ;;  %726 = vmatprep.subr.mxu1 %v2969_v55  ;;  %v2991_v52 = vld [vmem:[#allocation35_spill] sm:$0xff] }
 0x139   :  { %656 = vmatpush1.msra.mxu0 %v2970_v48  ;;  %727 = vmatpush1.msra.mxu1 %v2971_v53  ;;  %v2982_v53 = vld [vmem:[#allocation29_spill] sm:$0xff] }
 0x13a   :  { %657 = vmatprep.subr.mxu0 %v2972_v50  ;;  %728 = vmatprep.subr.mxu1 %v2973_v47  ;;  %v2983_v50 = vmov 0.0   ;;  %v2984_v47 = vld [vmem:[#allocation30_spill] sm:$0xff] }
 0x13b   :  { %658 = vmatpush1.msra.mxu0 %v2974_v60  ;;  %729 = vmatpush1.msra.mxu1 %v2975_v3  ;;  %v2985_v3 = vld [vmem:[#allocation7_spill] sm:$0xff] }
 0x13c   :  { %659 = vmatprep.subr.mxu0 %v2976_v1  ;;  %730 = vmatprep.subr.mxu1 %v2977_v46  ;;  %v2986_v1 = vld [vmem:[#allocation8_spill] sm:$0xff] }
 0x13d   :  { %660 = vmatpush1.msra.mxu0 %v2978_v63  ;;  %731 = vmatpush1.msra.mxu1 %v2979_v59  ;;  %v41_v59 = vld [vmem:[%s2807_s0 + $0x10] sm:$0xff] }
 0x13e   :  { %661 = vmatprep.subr.mxu0 %v2980_v0  ;;  %732 = vmatprep.subr.mxu1 %v2981_v56  ;;  %v42_v56 = vld [vmem:[%s2807_s0 + $0x18] sm:$0xff]  ;;  %v2988_v0 = vld [vmem:[#allocation32_spill] sm:$0xff] }
 0x13f   :  { %662 = vmatpush1.msra.mxu0 %v2982_v53  ;;  %695 = vmatprep.mubr.f32.mxu0 %v2983_v50  ;;  %v2989_v63 = vld [vmem:[#allocation33_spill] sm:$0xff] }
 0x140   :  { %733 = vmatpush1.msra.mxu1 %v2984_v47  ;;  %766 = vmatprep.mubr.f32.mxu1 %v2983_v50  ;;  %v44_v47 = vld [vmem:[%s2807_s0 + $0x28] sm:$0xff] }
 0x141   :  { %799 = vmatprep.subr.mxu0 %v2985_v3  ;;  %870 = vmatprep.subr.mxu1 %v2986_v1  ;;  %v46_v3 = vld [vmem:[%s2807_s0 + $0x38] sm:$0xff]  ;;  %v56_v1 = vpop.permute.xlu0 %55  ;;  %v2987_v50 = vld [vmem:[#allocation31_spill] sm:$0xff] }
 0x142   :  { %60 = vperm.xlu1 %1668, %v41_v59   ;;  %v113_v53 = vmul.f32 %v2987_v50, %v56_v1  ;;  %v114_v59 = vmul.f32 %v2988_v0, %v56_v1  ;;  %v116_v0 = vmul.f32 %v2180_v62, %v56_v1 }
 0x144   :  { %v167_v46 = vadd.f32 %v2989_v63, %v113_v53  ;;  %v168_v49 = vadd.f32 %v2991_v52, %v114_v59  ;;  %v170_v53 = vadd.f32 %v2184_v61, %v116_v0 }
 0x146   :  { %65 = vperm.xlu1 %1668, %v42_v56   ;;  %v2990_v56 = vld [vmem:[#allocation34_spill] sm:$0xff] }
 0x147   :  { %v115_v55 = vmul.f32 %v2990_v56, %v56_v1 }
 0x14a   :  { %75 = vperm.xlu1 %1668, %v44_v47  }
 0x14e   :  { %85 = vperm.xlu1 %1668, %v46_v3   ;;  %v169_v3 = vadd.f32 %v2177_v51, %v115_v55 }
 0x1e0   :  { %v529_v60 = vpop.f32.mrf.mxu0  ;;  %v600_v4 = vpop.f32.mrf.mxu1 }
 0x1e1   :  { %v605_v48 = vadd.f32 %v529_v60, %v167_v46  ;;  %v607_v45 = vadd.f32 %v600_v4, %v169_v3  ;;  %v2995_v3 = vld [vmem:[#allocation12_spill] sm:$0xff] }
 0x1e2   :  { %v531_v57 = vpop.f32.mrf.mxu0  ;;  %v602_v50 = vpop.f32.mrf.mxu1 }
 0x1e3   :  { %v609_v47 = vmul.f32 0.5, %v605_v48  ;;  %v606_v2 = vadd.f32 %v531_v57, %v168_v49  ;;  %v608_v60 = vadd.f32 %v602_v50, %v170_v53  ;;  %v2996_v53 = vld [vmem:[#allocation13_spill] sm:$0xff] }
 0x1e5   :  { %1679 = vtanh.f32 %v609_v47  ;;  %v613_v58 = vmul.f32 0.5, %v606_v2  ;;  %v618_v46 = vmul.f32 0.5, %v608_v60  ;;  %v2997_v60 = vld [vmem:[#allocation14_spill] sm:$0xff] }
 0x1e7   :  { %1681 = vtanh.f32 %v613_v58 }
 0x1e8   :  { %1683 = vtanh.f32 %v607_v45 }
 0x1e9   :  { %1685 = vtanh.f32 %v618_v46  ;;  %v2998_v46 = vld [vmem:[#allocation15_spill] sm:$0xff] }
 0x1f2   :  { %v1680_v56 = vpop.eup %1679 }
 0x1f3   :  { %v611_v59 = vmul.f32 0.5, %v1680_v56  ;;  %v2994_v56 = vld [vmem:[#allocation11_spill] sm:$0xff] }
 0x1f4   :  { %v1682_v52 = vpop.eup %1681 }
 0x1f5   :  { %v612_v48 = vadd.f32 0.5, %v611_v59  ;;  %v615_v57 = vmul.f32 0.5, %v1682_v52  ;;  %v1684_v47 = vpop.eup %1683  ;;  %v2993_v52 = vld [vmem:[#allocation10_spill] sm:$0xff]  ;;  %v2999_v59 = vld [vmem:[#allocation16_spill] sm:$0xff] }
 0x1f6   :  { %v1686_v45 = vpop.eup %1685 }
 0x1f7   :  { %v616_v49 = vadd.f32 0.5, %v615_v57  ;;  %v623_v4 = vmul.f32 %v1684_v47, %v612_v48  ;;  %v620_v55 = vmul.f32 0.5, %v1686_v45  ;;  %v3000_v48 = vld [vmem:[#allocation17_spill] sm:$0xff]  ;;  %v3001_v57 = vld [vmem:[#allocation18_spill] sm:$0xff]  ;;  %v3003_v47 = vld [vmem:[#allocation20_spill] sm:$0xff] }
 0x1f8   :  { %v3006_v45 = vld [vmem:[#allocation23_spill] sm:$0xff] }
 0x1f9   :  { %v622_v2 = vmul.f32 %v616_v49, %v2187_v54  ;;  %v621_v1 = vadd.f32 0.5, %v620_v55  ;;  %v2992_v54 = vld [vmem:[#allocation9_spill] sm:$0xff]  ;;  %v3002_v49 = vld [vmem:[#allocation19_spill] sm:$0xff]  ;;  %v3007_v55 = vld [vmem:[#allocation24_spill] sm:$0xff] }
 0x1fb   :  { %v2277_v58 = vadd.f32 %v623_v4, %v622_v2  ;;  %v3004_v2 = vld [vmem:[#allocation21_spill] sm:$0xff]  ;;  %v3005_v4 = vld [vmem:[#allocation22_spill] sm:$0xff] }
 0x1fd   :  { %1687 = vtanh.f32 %v2277_v58 }
 0x20a   :  { %v1688_v50 = vpop.eup %1687 }
 0x20b   :  { %v626_v0 = vmul.f32 %v1688_v50, %v621_v1  ;;  %v3008_v1 = vld [vmem:[#allocation25_spill] sm:$0xff]  ;;  %v3009_v50 = vld [vmem:[#allocation26_spill] sm:$0xff] }
 0x20d   :  { %696 = vmatmul.mubr.f32.vlgmr.msra.gmra.mxu0 %v626_v0  ;;  %767 = vmatmul.mubr.f32.vlgmr.msra.gmra.mxu1 %v626_v0  ;;  %v3010_v0 = vld [vmem:[#allocation27_spill] sm:$0xff] }
 0x20e   :  { %800 = vmatpush1.msra.mxu0 %v1887_v5  ;;  %871 = vmatpush1.msra.mxu1 %v1891_v6 }
 0x20f   :  { %801 = vmatprep.subr.mxu0 %v1893_v7  ;;  %872 = vmatprep.subr.mxu1 %v1895_v8 }
 0x210   :  { %802 = vmatpush1.msra.mxu0 %v1899_v9  ;;  %873 = vmatpush1.msra.mxu1 %v1901_v10 }
 0x211   :  { %803 = vmatprep.subr.mxu0 %v1903_v11  ;;  %874 = vmatprep.subr.mxu1 %v1907_v12 }
 0x212   :  { %804 = vmatpush1.msra.mxu0 %v1909_v13  ;;  %875 = vmatpush1.msra.mxu1 %v1911_v14 }
 0x213   :  { %805 = vmatprep.subr.mxu0 %v1915_v15  ;;  %876 = vmatprep.subr.mxu1 %v1917_v16 }
 0x214   :  { %806 = vmatpush1.msra.mxu0 %v1921_v17  ;;  %877 = vmatpush1.msra.mxu1 %v1923_v18 }
 0x215   :  { %807 = vmatprep.subr.mxu0 %v1927_v19  ;;  %878 = vmatprep.subr.mxu1 %v1929_v20 }
 0x216   :  { %808 = vmatpush1.msra.mxu0 %v1933_v21  ;;  %879 = vmatpush1.msra.mxu1 %v1935_v22 }
 0x217   :  { %809 = vmatprep.subr.mxu0 %v1939_v23  ;;  %880 = vmatprep.subr.mxu1 %v1941_v24 }
 0x218   :  { %810 = vmatpush1.msra.mxu0 %v1945_v25  ;;  %881 = vmatpush1.msra.mxu1 %v1947_v26 }
 0x219   :  { %811 = vmatprep.subr.mxu0 %v1951_v27  ;;  %882 = vmatprep.subr.mxu1 %v1953_v28 }
 0x21a   :  { %812 = vmatpush1.msra.mxu0 %v1957_v29  ;;  %883 = vmatpush1.msra.mxu1 %v1959_v30 }
 0x21b   :  { %813 = vmatprep.subr.mxu0 %v1963_v31  ;;  %884 = vmatprep.subr.mxu1 %v1965_v32 }
 0x21c   :  { %814 = vmatpush1.msra.mxu0 %v1969_v33  ;;  %885 = vmatpush1.msra.mxu1 %v1971_v34 }
 0x21d   :  { %815 = vmatprep.subr.mxu0 %v1975_v35  ;;  %886 = vmatprep.subr.mxu1 %v1977_v36 }
 0x21e   :  { %816 = vmatpush1.msra.mxu0 %v1981_v37  ;;  %887 = vmatpush1.msra.mxu1 %v1983_v38 }
 0x21f   :  { %817 = vmatprep.subr.mxu0 %v1987_v39  ;;  %888 = vmatprep.subr.mxu1 %v1989_v40 }
 0x220   :  { %818 = vmatpush1.msra.mxu0 %v1993_v41  ;;  %889 = vmatpush1.msra.mxu1 %v1995_v42 }
 0x221   :  { %819 = vmatprep.subr.mxu0 %v1999_v43  ;;  %890 = vmatprep.subr.mxu1 %v2001_v44 }
 0x222   :  { %820 = vmatpush1.msra.mxu0 %v2992_v54  ;;  %891 = vmatpush1.msra.mxu1 %v2993_v52 }
 0x223   :  { %821 = vmatprep.subr.mxu0 %v2994_v56  ;;  %892 = vmatprep.subr.mxu1 %v2995_v3 }
 0x224   :  { %822 = vmatpush1.msra.mxu0 %v2996_v53  ;;  %893 = vmatpush1.msra.mxu1 %v2997_v60 }
 0x225   :  { %823 = vmatprep.subr.mxu0 %v2998_v46  ;;  %894 = vmatprep.subr.mxu1 %v2999_v59 }
 0x226   :  { %824 = vmatpush1.msra.mxu0 %v3000_v48  ;;  %895 = vmatpush1.msra.mxu1 %v3001_v57  ;;  %v3011_v48 = vld [vmem:[#allocation28_spill] sm:$0xff]  ;;  %v3012_v57 = vld [vmem:[#allocation29_spill] sm:$0xff] }
 0x227   :  { %825 = vmatprep.subr.mxu0 %v3002_v49  ;;  %896 = vmatprep.subr.mxu1 %v3003_v47  ;;  %v3013_v49 = vmov 0.0   ;;  %v3014_v47 = vld [vmem:[#allocation30_spill] sm:$0xff] }
 0x228   :  { %826 = vmatpush1.msra.mxu0 %v3004_v2  ;;  %897 = vmatpush1.msra.mxu1 %v3005_v4  ;;  %v3015_v4 = vld [vmem:[#allocation7_spill] sm:$0xff] }
 0x229   :  { %827 = vmatprep.subr.mxu0 %v3006_v45  ;;  %898 = vmatprep.subr.mxu1 %v3007_v55  ;;  %v3016_v45 = vld [vmem:[#allocation8_spill] sm:$0xff]  ;;  %v61_v55 = vpop.permute.xlu1 %60 }
 0x22a   :  { %828 = vmatpush1.msra.mxu0 %v3008_v1  ;;  %899 = vmatpush1.msra.mxu1 %v3009_v50  ;;  %v3017_v1 = vld [vmem:[#allocation31_spill] sm:$0xff]  ;;  %v3018_v50 = vld [vmem:[#allocation32_spill] sm:$0xff] }
 0x22b   :  { %829 = vmatprep.subr.mxu0 %v3010_v0  ;;  %900 = vmatprep.subr.mxu1 %v3011_v48  ;;  %v117_v2 = vmul.f32 %v3017_v1, %v61_v55  ;;  %v118_v59 = vmul.f32 %v3018_v50, %v61_v55  ;;  %v3019_v48 = vld [vmem:[#allocation34_spill] sm:$0xff]  ;;  %v120_v1 = vmul.f32 %v2180_v62, %v61_v55 }
 0x22c   :  { %830 = vmatpush1.msra.mxu0 %v3012_v57  ;;  %863 = vmatprep.mubr.f32.mxu0 %v3013_v49  ;;  %v119_v46 = vmul.f32 %v3019_v48, %v61_v55  ;;  %v3020_v57 = vld [vmem:[#allocation35_spill] sm:$0xff] }
 0x22d   :  { %901 = vmatpush1.msra.mxu1 %v3014_v47  ;;  %934 = vmatprep.mubr.f32.mxu1 %v3013_v49  ;;  %v171_v0 = vadd.f32 %v2989_v63, %v117_v2  ;;  %v172_v60 = vadd.f32 %v3020_v57, %v118_v59  ;;  %v174_v2 = vadd.f32 %v2184_v61, %v120_v1 }
 0x22e   :  { %967 = vmatprep.subr.mxu0 %v3015_v4  ;;  %1038 = vmatprep.subr.mxu1 %v3016_v45  ;;  %v173_v49 = vadd.f32 %v2177_v51, %v119_v46 }
 0x2cd   :  { %v697_v53 = vpop.f32.mrf.mxu0  ;;  %v768_v52 = vpop.f32.mrf.mxu1 }
 0x2ce   :  { %v773_v3 = vadd.f32 %v697_v53, %v171_v0  ;;  %v775_v54 = vadd.f32 %v768_v52, %v173_v49 }
 0x2cf   :  { %v699_v47 = vpop.f32.mrf.mxu0  ;;  %v770_v63 = vpop.f32.mrf.mxu1 }
 0x2d0   :  { %v777_v56 = vmul.f32 0.5, %v773_v3  ;;  %v774_v4 = vadd.f32 %v699_v47, %v172_v60  ;;  %v776_v48 = vadd.f32 %v770_v63, %v174_v2 }
 0x2d2   :  { %1689 = vtanh.f32 %v777_v56  ;;  %v781_v45 = vmul.f32 0.5, %v774_v4  ;;  %v786_v59 = vmul.f32 0.5, %v776_v48 }
 0x2d4   :  { %1691 = vtanh.f32 %v781_v45 }
 0x2d5   :  { %1693 = vtanh.f32 %v775_v54 }
 0x2d6   :  { %1695 = vtanh.f32 %v786_v59 }
 0x2df   :  { %v1690_v57 = vpop.eup %1689 }
 0x2e0   :  { %v779_v53 = vmul.f32 0.5, %v1690_v57 }
 0x2e1   :  { %v1692_v0 = vpop.eup %1691 }
 0x2e2   :  { %v780_v3 = vadd.f32 0.5, %v779_v53  ;;  %v783_v50 = vmul.f32 0.5, %v1692_v0  ;;  %v1694_v46 = vpop.eup %1693 }
 0x2e3   :  { %v1696_v52 = vpop.eup %1695 }
 0x2e4   :  { %v784_v60 = vadd.f32 0.5, %v783_v50  ;;  %v791_v47 = vmul.f32 %v1694_v46, %v780_v3  ;;  %v788_v49 = vmul.f32 0.5, %v1696_v52 }
 0x2e6   :  { %v790_v56 = vmul.f32 %v784_v60, %v2277_v58  ;;  %v789_v54 = vadd.f32 0.5, %v788_v49 }
 0x2e8   :  { %v2355_v55 = vadd.f32 %v791_v47, %v790_v56 }
 0x2ea   :  { %1697 = vtanh.f32 %v2355_v55 }
 0x2f7   :  { %v1698_v63 = vpop.eup %1697 }
 0x2f8   :  { %v794_v48 = vmul.f32 %v1698_v63, %v789_v54 }
 0x2fa   :  { %864 = vmatmul.mubr.f32.vlgmr.msra.gmra.mxu0 %v794_v48  ;;  %935 = vmatmul.mubr.f32.vlgmr.msra.gmra.mxu1 %v794_v48 }
 0x2fb   :  { %968 = vmatpush1.msra.mxu0 %v1887_v5  ;;  %1039 = vmatpush1.msra.mxu1 %v1891_v6  ;;  %v3021_v5 = vld [vmem:[#allocation9_spill] sm:$0xff]  ;;  %v3022_v6 = vld [vmem:[#allocation10_spill] sm:$0xff] }
 0x2fc   :  { %969 = vmatprep.subr.mxu0 %v1893_v7  ;;  %1040 = vmatprep.subr.mxu1 %v1895_v8  ;;  %v3023_v7 = vld [vmem:[#allocation11_spill] sm:$0xff]  ;;  %v3024_v8 = vld [vmem:[#allocation12_spill] sm:$0xff] }
 0x2fd   :  { %970 = vmatpush1.msra.mxu0 %v1899_v9  ;;  %1041 = vmatpush1.msra.mxu1 %v1901_v10  ;;  %v3025_v9 = vld [vmem:[#allocation13_spill] sm:$0xff]  ;;  %v3026_v10 = vld [vmem:[#allocation14_spill] sm:$0xff] }
 0x2fe   :  { %971 = vmatprep.subr.mxu0 %v1903_v11  ;;  %1042 = vmatprep.subr.mxu1 %v1907_v12  ;;  %v3027_v11 = vld [vmem:[#allocation15_spill] sm:$0xff]  ;;  %v3028_v12 = vld [vmem:[#allocation16_spill] sm:$0xff] }
 0x2ff   :  { %972 = vmatpush1.msra.mxu0 %v1909_v13  ;;  %1043 = vmatpush1.msra.mxu1 %v1911_v14  ;;  %v3029_v13 = vld [vmem:[#allocation17_spill] sm:$0xff]  ;;  %v3030_v14 = vld [vmem:[#allocation18_spill] sm:$0xff] }
 0x300   :  { %973 = vmatprep.subr.mxu0 %v1915_v15  ;;  %1044 = vmatprep.subr.mxu1 %v1917_v16  ;;  %v3031_v15 = vld [vmem:[#allocation19_spill] sm:$0xff]  ;;  %v3032_v16 = vld [vmem:[#allocation20_spill] sm:$0xff] }
 0x301   :  { %974 = vmatpush1.msra.mxu0 %v1921_v17  ;;  %1045 = vmatpush1.msra.mxu1 %v1923_v18  ;;  %v3033_v17 = vld [vmem:[#allocation21_spill] sm:$0xff]  ;;  %v3034_v18 = vld [vmem:[#allocation22_spill] sm:$0xff] }
 0x302   :  { %975 = vmatprep.subr.mxu0 %v1927_v19  ;;  %1046 = vmatprep.subr.mxu1 %v1929_v20  ;;  %v3035_v19 = vld [vmem:[#allocation23_spill] sm:$0xff]  ;;  %v3036_v20 = vld [vmem:[#allocation24_spill] sm:$0xff] }
 0x303   :  { %976 = vmatpush1.msra.mxu0 %v1933_v21  ;;  %1047 = vmatpush1.msra.mxu1 %v1935_v22  ;;  %v3037_v21 = vld [vmem:[#allocation25_spill] sm:$0xff]  ;;  %v3038_v22 = vld [vmem:[#allocation26_spill] sm:$0xff] }
 0x304   :  { %977 = vmatprep.subr.mxu0 %v1939_v23  ;;  %1048 = vmatprep.subr.mxu1 %v1941_v24  ;;  %v3039_v23 = vld [vmem:[#allocation27_spill] sm:$0xff]  ;;  %v3040_v24 = vld [vmem:[#allocation28_spill] sm:$0xff] }
 0x305   :  { %978 = vmatpush1.msra.mxu0 %v1945_v25  ;;  %1049 = vmatpush1.msra.mxu1 %v1947_v26  ;;  %v3041_v25 = vld [vmem:[#allocation29_spill] sm:$0xff]  ;;  %v3042_v26 = vmov 0.0  }
 0x306   :  { %979 = vmatprep.subr.mxu0 %v1951_v27  ;;  %1050 = vmatprep.subr.mxu1 %v1953_v28  ;;  %v3043_v27 = vld [vmem:[#allocation30_spill] sm:$0xff]  ;;  %v2422_v28 = vld [vmem:[#allocation4 + $0x1e8] sm:$0xff] }
 0x307   :  { %980 = vmatpush1.msra.mxu0 %v1957_v29  ;;  %1051 = vmatpush1.msra.mxu1 %v1959_v30  ;;  %3044 = vst [vmem:[#allocation7_spill] sm:$0xff] %v2422_v28  ;;  %v2425_v29 = vld [vmem:[#allocation4 + $0x1f8] sm:$0xff]  ;;  %v66_v30 = vpop.permute.xlu1 %65 }
 0x308   :  { %981 = vmatprep.subr.mxu0 %v1963_v31  ;;  %1052 = vmatprep.subr.mxu1 %v1965_v32  ;;  %3045 = vst [vmem:[#allocation8_spill] sm:$0xff] %v2425_v29  ;;  %v3046_v31 = vld [vmem:[#allocation31_spill] sm:$0xff]  ;;  %v124_v45 = vmul.f32 %v2180_v62, %v66_v30 }
 0x309   :  { %982 = vmatpush1.msra.mxu0 %v1969_v33  ;;  %1053 = vmatpush1.msra.mxu1 %v1971_v34  ;;  %v121_v32 = vmul.f32 %v3046_v31, %v66_v30  ;;  %v3047_v33 = vld [vmem:[#allocation32_spill] sm:$0xff] }
 0x30a   :  { %983 = vmatprep.subr.mxu0 %v1975_v35  ;;  %1054 = vmatprep.subr.mxu1 %v1977_v36  ;;  %v122_v34 = vmul.f32 %v3047_v33, %v66_v30  ;;  %v3048_v35 = vld [vmem:[#allocation33_spill] sm:$0xff]  ;;  %v178_v59 = vadd.f32 %v2184_v61, %v124_v45 }
 0x30b   :  { %984 = vmatpush1.msra.mxu0 %v1981_v37  ;;  %1055 = vmatpush1.msra.mxu1 %v1983_v38  ;;  %v175_v36 = vadd.f32 %v3048_v35, %v121_v32  ;;  %v2497_v32 = vld [vmem:[#allocation4 + $0x158] sm:$0xff]  ;;  %v2539_v45 = vld [vmem:[#allocation4 + $0xf0] sm:$0xff] }
 0x30c   :  { %985 = vmatprep.subr.mxu0 %v1987_v39  ;;  %1056 = vmatprep.subr.mxu1 %v1989_v40  ;;  %v3049_v39 = vld [vmem:[#allocation34_spill] sm:$0xff] }
 0x30d   :  { %986 = vmatpush1.msra.mxu0 %v1993_v41  ;;  %1057 = vmatpush1.msra.mxu1 %v1995_v42  ;;  %v123_v40 = vmul.f32 %v3049_v39, %v66_v30  ;;  %v3050_v41 = vld [vmem:[#allocation35_spill] sm:$0xff]  ;;  %v2494_v30 = vld [vmem:[#allocation4 + $0x148] sm:$0xff] }
 0x30e   :  { %987 = vmatprep.subr.mxu0 %v1999_v43  ;;  %1058 = vmatprep.subr.mxu1 %v2001_v44  ;;  %v176_v42 = vadd.f32 %v3050_v41, %v122_v34  ;;  %v2500_v34 = vld [vmem:[#allocation4 + $0x140] sm:$0xff] }
 0x30f   :  { %988 = vmatpush1.msra.mxu0 %v3021_v5  ;;  %1059 = vmatpush1.msra.mxu1 %v3022_v6  ;;  %v177_v1 = vadd.f32 %v2177_v51, %v123_v40  ;;  %v2512_v40 = vld [vmem:[#allocation4 + $0x120] sm:$0xff] }
 0x310   :  { %989 = vmatprep.subr.mxu0 %v3023_v7  ;;  %1060 = vmatprep.subr.mxu1 %v3024_v8 }
 0x311   :  { %990 = vmatpush1.msra.mxu0 %v3025_v9  ;;  %1061 = vmatpush1.msra.mxu1 %v3026_v10  ;;  %v2440_v10 = vld [vmem:[#allocation4 + $0x1e0] sm:$0xff] }
 0x312   :  { %991 = vmatprep.subr.mxu0 %v3027_v11  ;;  %1062 = vmatprep.subr.mxu1 %v3028_v12  ;;  %v2443_v11 = vld [vmem:[#allocation4 + $0x1f0] sm:$0xff]  ;;  %v2449_v12 = vld [vmem:[#allocation4 + $0x1d8] sm:$0xff] }
 0x313   :  { %992 = vmatpush1.msra.mxu0 %v3029_v13  ;;  %1063 = vmatpush1.msra.mxu1 %v3030_v14  ;;  %v2452_v13 = vld [vmem:[#allocation4 + $0x1c0] sm:$0xff]  ;;  %v2455_v14 = vld [vmem:[#allocation4 + $0x1d0] sm:$0xff] }
 0x314   :  { %993 = vmatprep.subr.mxu0 %v3031_v15  ;;  %1064 = vmatprep.subr.mxu1 %v3032_v16  ;;  %v2458_v15 = vld [vmem:[#allocation4 + $0x1a8] sm:$0xff]  ;;  %v2461_v16 = vld [vmem:[#allocation4 + $0x1b8] sm:$0xff] }
 0x315   :  { %994 = vmatpush1.msra.mxu0 %v3033_v17  ;;  %1065 = vmatpush1.msra.mxu1 %v3034_v18  ;;  %v2464_v17 = vld [vmem:[#allocation4 + $0x1a0] sm:$0xff]  ;;  %v2467_v18 = vld [vmem:[#allocation4 + $0x1b0] sm:$0xff] }
 0x316   :  { %995 = vmatprep.subr.mxu0 %v3035_v19  ;;  %1066 = vmatprep.subr.mxu1 %v3036_v20  ;;  %v2470_v19 = vld [vmem:[#allocation4 + $0x188] sm:$0xff]  ;;  %v2473_v20 = vld [vmem:[#allocation4 + $0x198] sm:$0xff] }
 0x317   :  { %996 = vmatpush1.msra.mxu0 %v3037_v21  ;;  %1067 = vmatpush1.msra.mxu1 %v3038_v22  ;;  %v2476_v21 = vld [vmem:[#allocation4 + $0x180] sm:$0xff]  ;;  %v2479_v22 = vld [vmem:[#allocation4 + $0x190] sm:$0xff] }
 0x318   :  { %997 = vmatprep.subr.mxu0 %v3039_v23  ;;  %1068 = vmatprep.subr.mxu1 %v3040_v24  ;;  %v2482_v23 = vld [vmem:[#allocation4 + $0x168] sm:$0xff]  ;;  %v2485_v24 = vld [vmem:[#allocation4 + $0x178] sm:$0xff] }
 0x319   :  { %998 = vmatpush1.msra.mxu0 %v3041_v25  ;;  %1031 = vmatprep.mubr.f32.mxu0 %v3042_v26  ;;  %v2488_v25 = vld [vmem:[#allocation4 + $0x160] sm:$0xff] }
 0x31a   :  { %1069 = vmatpush1.msra.mxu1 %v3043_v27  ;;  %1102 = vmatprep.mubr.f32.mxu1 %v3042_v26  ;;  %v2491_v27 = vld [vmem:[#allocation4 + $0x170] sm:$0xff] }
 0x31b   :  { %1135 = vmatprep.subr.mxu0 %v2422_v28  ;;  %1206 = vmatprep.subr.mxu1 %v2425_v29 }
 0x3ba   :  { %v865_v37 = vpop.f32.mrf.mxu0  ;;  %v936_v57 = vpop.f32.mrf.mxu1 }
 0x3bb   :  { %v941_v38 = vadd.f32 %v865_v37, %v175_v36  ;;  %v943_v4 = vadd.f32 %v936_v57, %v177_v1  ;;  %v2503_v36 = vld [vmem:[#allocation4 + $0x150] sm:$0xff]  ;;  %v2506_v37 = vld [vmem:[#allocation4 + $0x128] sm:$0xff] }
 0x3bc   :  { %v867_v43 = vpop.f32.mrf.mxu0  ;;  %v938_v2 = vpop.f32.mrf.mxu1  ;;  %v2527_v57 = vld [vmem:[#allocation4 + $0x110] sm:$0xff]  ;;  %v2530_v1 = vld [vmem:[#allocation4 + $0xe8] sm:$0xff] }
 0x3bd   :  { %v945_v44 = vmul.f32 0.5, %v941_v38  ;;  %v942_v58 = vadd.f32 %v867_v43, %v176_v42  ;;  %v944_v53 = vadd.f32 %v938_v2, %v178_v59  ;;  %v2509_v38 = vld [vmem:[#allocation4 + $0x138] sm:$0xff]  ;;  %v2515_v42 = vld [vmem:[#allocation4 + $0x130] sm:$0xff]  ;;  %v2518_v43 = vld [vmem:[#allocation4 + $0x108] sm:$0xff] }
 0x3be   :  { %v2542_v2 = vld [vmem:[#allocation4 + $0xc8] sm:$0xff]  ;;  %v2545_v59 = vld [vmem:[#allocation4 + $0xd8] sm:$0xff] }
 0x3bf   :  { %1699 = vtanh.f32 %v945_v44  ;;  %v949_v50 = vmul.f32 0.5, %v942_v58  ;;  %v954_v0 = vmul.f32 0.5, %v944_v53  ;;  %v2521_v44 = vld [vmem:[#allocation4 + $0x118] sm:$0xff]  ;;  %v2524_v58 = vld [vmem:[#allocation4 + $0x100] sm:$0xff] }
 0x3c0   :  { %v2548_v53 = vld [vmem:[#allocation4 + $0xc0] sm:$0xff] }
 0x3c1   :  { %1701 = vtanh.f32 %v949_v50  ;;  %v2533_v50 = vld [vmem:[#allocation4 + $0xf8] sm:$0xff] }
 0x3c2   :  { %1703 = vtanh.f32 %v943_v4  ;;  %v2536_v4 = vld [vmem:[#allocation4 + $0xe0] sm:$0xff] }
 0x3c3   :  { %1705 = vtanh.f32 %v954_v0  ;;  %v2551_v0 = vld [vmem:[#allocation4 + $0xd0] sm:$0xff] }
 0x3cc   :  { %v1700_v3 = vpop.eup %1699 }
 0x3cd   :  { %v947_v60 = vmul.f32 0.5, %v1700_v3  ;;  %v2554_v3 = vld [vmem:[#allocation4 + $0xa8] sm:$0xff] }
 0x3ce   :  { %v1702_v46 = vpop.eup %1701 }
 0x3cf   :  { %v948_v56 = vadd.f32 0.5, %v947_v60  ;;  %v951_v47 = vmul.f32 0.5, %v1702_v46  ;;  %v1704_v49 = vpop.eup %1703  ;;  %v2557_v60 = vld [vmem:[#allocation4 + $0xb8] sm:$0xff]  ;;  %v2560_v46 = vld [vmem:[#allocation4 + $0xa0] sm:$0xff] }
 0x3d0   :  { %v1706_v5 = vpop.eup %1705  ;;  %3051 = vst [vmem:[#allocation9_spill] sm:$0xff] %v2560_v46 }
 0x3d1   :  { %v952_v52 = vadd.f32 0.5, %v951_v47  ;;  %v959_v63 = vmul.f32 %v1704_v49, %v948_v56  ;;  %v956_v6 = vmul.f32 0.5, %v1706_v5  ;;  %v2563_v56 = vld [vmem:[#allocation4 + $0xb0] sm:$0xff]  ;;  %v2566_v47 = vld [vmem:[#allocation4 + $0x88] sm:$0xff]  ;;  %v2572_v49 = vld [vmem:[#allocation4 + $0x80] sm:$0xff] }
 0x3d2   :  { %3052 = vst [vmem:[#allocation10_spill] sm:$0xff] %v2563_v56  ;;  %3053 = vst [vmem:[#allocation11_spill] sm:$0xff] %v2566_v47  ;;  %v2581_v5 = vld [vmem:[#allocation4 + $0x78] sm:$0xff] }
 0x3d3   :  { %v958_v54 = vmul.f32 %v952_v52, %v2355_v55  ;;  %v957_v7 = vadd.f32 0.5, %v956_v6  ;;  %v2446_v55 = vld [vmem:[#allocation4 + $0x1c8] sm:$0xff]  ;;  %v2569_v52 = vld [vmem:[#allocation4 + $0x98] sm:$0xff]  ;;  %3055 = vst [vmem:[#allocation13_spill] sm:$0xff] %v2572_v49  ;;  %3058 = vst [vmem:[#allocation16_spill] sm:$0xff] %v2581_v5 }
 0x3d4   :  { %3054 = vst [vmem:[#allocation12_spill] sm:$0xff] %v2569_v52  ;;  %v2584_v6 = vld [vmem:[#allocation4 + $0x60] sm:$0xff] }
 0x3d5   :  { %v2437_v48 = vadd.f32 %v959_v63, %v958_v54  ;;  %v2575_v54 = vld [vmem:[#allocation4 + $0x90] sm:$0xff]  ;;  %v2578_v63 = vld [vmem:[#allocation4 + $0x68] sm:$0xff]  ;;  %3059 = vst [vmem:[#allocation17_spill] sm:$0xff] %v2584_v6 }
 0x3d6   :  { %3056 = vst [vmem:[#allocation14_spill] sm:$0xff] %v2575_v54  ;;  %3057 = vst [vmem:[#allocation15_spill] sm:$0xff] %v2578_v63 }
 0x3d7   :  { %1707 = vtanh.f32 %v2437_v48 }
 0x3e4   :  { %v1708_v8 = vpop.eup %1707 }
 0x3e5   :  { %v962_v9 = vmul.f32 %v1708_v8, %v957_v7  ;;  %v2587_v7 = vld [vmem:[#allocation4 + $0x70] sm:$0xff]  ;;  %v2590_v8 = vld [vmem:[#allocation4 + $0x48] sm:$0xff] }
 0x3e6   :  { %3060 = vst [vmem:[#allocation18_spill] sm:$0xff] %v2587_v7  ;;  %3061 = vst [vmem:[#allocation19_spill] sm:$0xff] %v2590_v8 }
 0x3e7   :  { %1032 = vmatmul.mubr.f32.vlgmr.msra.gmra.mxu0 %v962_v9  ;;  %1103 = vmatmul.mubr.f32.vlgmr.msra.gmra.mxu1 %v962_v9  ;;  %v2593_v9 = vld [vmem:[#allocation4 + $0x58] sm:$0xff] }
 0x3e8   :  { %1136 = vmatpush1.msra.mxu0 %v2440_v10  ;;  %1207 = vmatpush1.msra.mxu1 %v2443_v11  ;;  %3062 = vst [vmem:[#allocation20_spill] sm:$0xff] %v2593_v9 }
 0x3e9   :  { %1137 = vmatprep.subr.mxu0 %v2446_v55  ;;  %1208 = vmatprep.subr.mxu1 %v2449_v12 }
 0x3ea   :  { %1138 = vmatpush1.msra.mxu0 %v2452_v13  ;;  %1209 = vmatpush1.msra.mxu1 %v2455_v14 }
 0x3eb   :  { %1139 = vmatprep.subr.mxu0 %v2458_v15  ;;  %1210 = vmatprep.subr.mxu1 %v2461_v16 }
 0x3ec   :  { %1140 = vmatpush1.msra.mxu0 %v2464_v17  ;;  %1211 = vmatpush1.msra.mxu1 %v2467_v18 }
 0x3ed   :  { %1141 = vmatprep.subr.mxu0 %v2470_v19  ;;  %1212 = vmatprep.subr.mxu1 %v2473_v20 }
 0x3ee   :  { %1142 = vmatpush1.msra.mxu0 %v2476_v21  ;;  %1213 = vmatpush1.msra.mxu1 %v2479_v22 }
 0x3ef   :  { %1143 = vmatprep.subr.mxu0 %v2482_v23  ;;  %1214 = vmatprep.subr.mxu1 %v2485_v24 }
 0x3f0   :  { %1144 = vmatpush1.msra.mxu0 %v2488_v25  ;;  %1215 = vmatpush1.msra.mxu1 %v2491_v27 }
 0x3f1   :  { %1145 = vmatprep.subr.mxu0 %v2494_v30  ;;  %1216 = vmatprep.subr.mxu1 %v2497_v32 }
 0x3f2   :  { %1146 = vmatpush1.msra.mxu0 %v2500_v34  ;;  %1217 = vmatpush1.msra.mxu1 %v2503_v36 }
 0x3f3   :  { %1147 = vmatprep.subr.mxu0 %v2506_v37  ;;  %1218 = vmatprep.subr.mxu1 %v2509_v38 }
 0x3f4   :  { %1148 = vmatpush1.msra.mxu0 %v2512_v40  ;;  %1219 = vmatpush1.msra.mxu1 %v2515_v42 }
 0x3f5   :  { %1149 = vmatprep.subr.mxu0 %v2518_v43  ;;  %1220 = vmatprep.subr.mxu1 %v2521_v44 }
 0x3f6   :  { %1150 = vmatpush1.msra.mxu0 %v2524_v58  ;;  %1221 = vmatpush1.msra.mxu1 %v2527_v57 }
 0x3f7   :  { %1151 = vmatprep.subr.mxu0 %v2530_v1  ;;  %1222 = vmatprep.subr.mxu1 %v2533_v50 }
 0x3f8   :  { %1152 = vmatpush1.msra.mxu0 %v2536_v4  ;;  %1223 = vmatpush1.msra.mxu1 %v2539_v45 }
 0x3f9   :  { %1153 = vmatprep.subr.mxu0 %v2542_v2  ;;  %1224 = vmatprep.subr.mxu1 %v2545_v59 }
 0x3fa   :  { %1154 = vmatpush1.msra.mxu0 %v2548_v53  ;;  %1225 = vmatpush1.msra.mxu1 %v2551_v0 }
 0x3fb   :  { %1155 = vmatprep.subr.mxu0 %v2554_v3  ;;  %1226 = vmatprep.subr.mxu1 %v2557_v60 }
 0x3fc   :  { %1156 = vmatpush1.msra.mxu0 %v2560_v46  ;;  %1227 = vmatpush1.msra.mxu1 %v2563_v56 }
 0x3fd   :  { %1157 = vmatprep.subr.mxu0 %v2566_v47  ;;  %1228 = vmatprep.subr.mxu1 %v2569_v52 }
 0x3fe   :  { %1158 = vmatpush1.msra.mxu0 %v2572_v49  ;;  %1229 = vmatpush1.msra.mxu1 %v2575_v54 }
 0x3ff   :  { %1159 = vmatprep.subr.mxu0 %v2578_v63  ;;  %1230 = vmatprep.subr.mxu1 %v2581_v5  ;;  %v2596_v63 = vld [vmem:[#allocation4 + $0x40] sm:$0xff]  ;;  %v2599_v5 = vld [vmem:[#allocation4 + $0x50] sm:$0xff] }
 0x400   :  { %1160 = vmatpush1.msra.mxu0 %v2584_v6  ;;  %1231 = vmatpush1.msra.mxu1 %v2587_v7  ;;  %3063 = vst [vmem:[#allocation21_spill] sm:$0xff] %v2596_v63  ;;  %3064 = vst [vmem:[#allocation22_spill] sm:$0xff] %v2599_v5  ;;  %v2602_v6 = vld [vmem:[#allocation4 + $0x28] sm:$0xff]  ;;  %v2605_v7 = vld [vmem:[#allocation4 + $0x38] sm:$0xff] }
 0x401   :  { %1161 = vmatprep.subr.mxu0 %v2590_v8  ;;  %1232 = vmatprep.subr.mxu1 %v2593_v9  ;;  %3065 = vst [vmem:[#allocation23_spill] sm:$0xff] %v2602_v6  ;;  %3066 = vst [vmem:[#allocation24_spill] sm:$0xff] %v2605_v7  ;;  %v2608_v8 = vld [vmem:[#allocation4 + $0x20] sm:$0xff]  ;;  %v2611_v9 = vld [vmem:[#allocation4 + $0x30] sm:$0xff] }
 0x402   :  { %1162 = vmatpush1.msra.mxu0 %v2596_v63  ;;  %1233 = vmatpush1.msra.mxu1 %v2599_v5  ;;  %3067 = vst [vmem:[#allocation25_spill] sm:$0xff] %v2608_v8  ;;  %3068 = vst [vmem:[#allocation26_spill] sm:$0xff] %v2611_v9  ;;  %v2614_v63 = vld [vmem:[#allocation4 + $0x8] sm:$0xff]  ;;  %v2617_v5 = vld [vmem:[#allocation4 + $0x18] sm:$0xff] }
 0x403   :  { %1163 = vmatprep.subr.mxu0 %v2602_v6  ;;  %1234 = vmatprep.subr.mxu1 %v2605_v7  ;;  %3069 = vst [vmem:[#allocation27_spill] sm:$0xff] %v2614_v63  ;;  %3070 = vst [vmem:[#allocation28_spill] sm:$0xff] %v2617_v5  ;;  %v2620_v6 = vld [vmem:[#allocation4] sm:$0xff]  ;;  %v2624_v7 = vld [vmem:[#allocation4 + $0x10] sm:$0xff] }
 0x404   :  { %1164 = vmatpush1.msra.mxu0 %v2608_v8  ;;  %1235 = vmatpush1.msra.mxu1 %v2611_v9  ;;  %3071 = vst [vmem:[#allocation29_spill] sm:$0xff] %v2620_v6  ;;  %3072 = vst [vmem:[#allocation30_spill] sm:$0xff] %v2624_v7 }
 0x405   :  { %1165 = vmatprep.subr.mxu0 %v2614_v63  ;;  %1236 = vmatprep.subr.mxu1 %v2617_v5  ;;  %v71_v63 = vpop.permute.xlu0 %70 }
 0x406   :  { %1166 = vmatpush1.msra.mxu0 %v2620_v6  ;;  %1199 = vmatprep.mubr.f32.mxu0 %v3042_v26  ;;  %v125_v9 = vmul.f32 %v3046_v31, %v71_v63  ;;  %v126_v5 = vmul.f32 %v3047_v33, %v71_v63  ;;  %v127_v49 = vmul.f32 %v3049_v39, %v71_v63 }
 0x407   :  { %1237 = vmatpush1.msra.mxu1 %v2624_v7  ;;  %1270 = vmatprep.mubr.f32.mxu1 %v3042_v26  ;;  %v128_v33 = vmul.f32 %v2180_v62, %v71_v63  ;;  %v3076_v63 = vld [vmem:[#allocation12_spill] sm:$0xff] }
 0x408   :  { %1303 = vmatprep.subr.mxu0 %v2422_v28  ;;  %1374 = vmatprep.subr.mxu1 %v2425_v29  ;;  %v179_v8 = vadd.f32 %v3048_v35, %v125_v9  ;;  %v180_v52 = vadd.f32 %v3050_v41, %v126_v5  ;;  %v181_v29 = vadd.f32 %v2177_v51, %v127_v49 }
 0x4a7   :  { %v1033_v6 = vpop.f32.mrf.mxu0  ;;  %v1104_v56 = vpop.f32.mrf.mxu1 }
 0x4a8   :  { %v1109_v54 = vadd.f32 %v1033_v6, %v179_v8  ;;  %v1111_v46 = vadd.f32 %v1104_v56, %v181_v29  ;;  %v182_v6 = vadd.f32 %v2184_v61, %v128_v33 }
 0x4a9   :  { %v1035_v7 = vpop.f32.mrf.mxu0  ;;  %v1106_v31 = vpop.f32.mrf.mxu1 }
 0x4aa   :  { %v1113_v47 = vmul.f32 0.5, %v1109_v54  ;;  %v1110_v26 = vadd.f32 %v1035_v7, %v180_v52  ;;  %v1112_v8 = vadd.f32 %v1106_v31, %v182_v6  ;;  %v3077_v6 = vld [vmem:[#allocation13_spill] sm:$0xff] }
 0x4ac   :  { %1709 = vtanh.f32 %v1113_v47  ;;  %v1117_v28 = vmul.f32 0.5, %v1110_v26  ;;  %v1122_v9 = vmul.f32 0.5, %v1112_v8  ;;  %v3078_v8 = vld [vmem:[#allocation14_spill] sm:$0xff] }
 0x4ae   :  { %1711 = vtanh.f32 %v1117_v28 }
 0x4af   :  { %1713 = vtanh.f32 %v1111_v46 }
 0x4b0   :  { %1715 = vtanh.f32 %v1122_v9  ;;  %v3079_v9 = vld [vmem:[#allocation15_spill] sm:$0xff] }
 0x4b9   :  { %v1710_v39 = vpop.eup %1709 }
 0x4ba   :  { %v1115_v5 = vmul.f32 0.5, %v1710_v39  ;;  %v3073_v39 = vld [vmem:[#allocation9_spill] sm:$0xff] }
 0x4bb   :  { %v1712_v41 = vpop.eup %1711 }
 0x4bc   :  { %v1116_v54 = vadd.f32 0.5, %v1115_v5  ;;  %v1119_v52 = vmul.f32 0.5, %v1712_v41  ;;  %v1714_v7 = vpop.eup %1713  ;;  %v3074_v41 = vld [vmem:[#allocation10_spill] sm:$0xff]  ;;  %v3080_v5 = vld [vmem:[#allocation16_spill] sm:$0xff] }
 0x4bd   :  { %v1716_v46 = vpop.eup %1715 }
 0x4be   :  { %v1120_v47 = vadd.f32 0.5, %v1119_v52  ;;  %v1127_v29 = vmul.f32 %v1714_v7, %v1116_v54  ;;  %v1124_v56 = vmul.f32 0.5, %v1716_v46  ;;  %v3081_v54 = vld [vmem:[#allocation17_spill] sm:$0xff]  ;;  %v3082_v52 = vld [vmem:[#allocation18_spill] sm:$0xff]  ;;  %v3084_v7 = vld [vmem:[#allocation20_spill] sm:$0xff] }
 0x4bf   :  { %v3087_v46 = vld [vmem:[#allocation23_spill] sm:$0xff] }
 0x4c0   :  { %v1126_v26 = vmul.f32 %v1120_v47, %v2437_v48  ;;  %v1125_v33 = vadd.f32 0.5, %v1124_v56  ;;  %v3075_v48 = vld [vmem:[#allocation11_spill] sm:$0xff]  ;;  %v3088_v56 = vld [vmem:[#allocation24_spill] sm:$0xff] }
 0x4c1   :  { %v3083_v47 = vld [vmem:[#allocation19_spill] sm:$0xff] }
 0x4c2   :  { %v2639_v28 = vadd.f32 %v1127_v29, %v1126_v26  ;;  %v3085_v26 = vld [vmem:[#allocation21_spill] sm:$0xff]  ;;  %v3086_v29 = vld [vmem:[#allocation22_spill] sm:$0xff] }
 0x4c4   :  { %1717 = vtanh.f32 %v2639_v28 }
 0x4d1   :  { %v1718_v31 = vpop.eup %1717 }
 0x4d2   :  { %v1130_v49 = vmul.f32 %v1718_v31, %v1125_v33  ;;  %v3089_v33 = vld [vmem:[#allocation25_spill] sm:$0xff]  ;;  %v3090_v31 = vld [vmem:[#allocation26_spill] sm:$0xff] }
 0x4d4   :  { %1200 = vmatmul.mubr.f32.vlgmr.msra.gmra.mxu0 %v1130_v49  ;;  %1271 = vmatmul.mubr.f32.vlgmr.msra.gmra.mxu1 %v1130_v49  ;;  %v3091_v49 = vld [vmem:[#allocation27_spill] sm:$0xff] }
 0x4d5   :  { %1304 = vmatpush1.msra.mxu0 %v2440_v10  ;;  %1375 = vmatpush1.msra.mxu1 %v2443_v11 }
 0x4d6   :  { %1305 = vmatprep.subr.mxu0 %v2446_v55  ;;  %1376 = vmatprep.subr.mxu1 %v2449_v12 }
 0x4d7   :  { %1306 = vmatpush1.msra.mxu0 %v2452_v13  ;;  %1377 = vmatpush1.msra.mxu1 %v2455_v14 }
 0x4d8   :  { %1307 = vmatprep.subr.mxu0 %v2458_v15  ;;  %1378 = vmatprep.subr.mxu1 %v2461_v16 }
 0x4d9   :  { %1308 = vmatpush1.msra.mxu0 %v2464_v17  ;;  %1379 = vmatpush1.msra.mxu1 %v2467_v18 }
 0x4da   :  { %1309 = vmatprep.subr.mxu0 %v2470_v19  ;;  %1380 = vmatprep.subr.mxu1 %v2473_v20 }
 0x4db   :  { %1310 = vmatpush1.msra.mxu0 %v2476_v21  ;;  %1381 = vmatpush1.msra.mxu1 %v2479_v22 }
 0x4dc   :  { %1311 = vmatprep.subr.mxu0 %v2482_v23  ;;  %1382 = vmatprep.subr.mxu1 %v2485_v24 }
 0x4dd   :  { %1312 = vmatpush1.msra.mxu0 %v2488_v25  ;;  %1383 = vmatpush1.msra.mxu1 %v2491_v27 }
 0x4de   :  { %1313 = vmatprep.subr.mxu0 %v2494_v30  ;;  %1384 = vmatprep.subr.mxu1 %v2497_v32 }
 0x4df   :  { %1314 = vmatpush1.msra.mxu0 %v2500_v34  ;;  %1385 = vmatpush1.msra.mxu1 %v2503_v36 }
 0x4e0   :  { %1315 = vmatprep.subr.mxu0 %v2506_v37  ;;  %1386 = vmatprep.subr.mxu1 %v2509_v38 }
 0x4e1   :  { %1316 = vmatpush1.msra.mxu0 %v2512_v40  ;;  %1387 = vmatpush1.msra.mxu1 %v2515_v42 }
 0x4e2   :  { %1317 = vmatprep.subr.mxu0 %v2518_v43  ;;  %1388 = vmatprep.subr.mxu1 %v2521_v44 }
 0x4e3   :  { %1318 = vmatpush1.msra.mxu0 %v2524_v58  ;;  %1389 = vmatpush1.msra.mxu1 %v2527_v57 }
 0x4e4   :  { %1319 = vmatprep.subr.mxu0 %v2530_v1  ;;  %1390 = vmatprep.subr.mxu1 %v2533_v50 }
 0x4e5   :  { %1320 = vmatpush1.msra.mxu0 %v2536_v4  ;;  %1391 = vmatpush1.msra.mxu1 %v2539_v45 }
 0x4e6   :  { %1321 = vmatprep.subr.mxu0 %v2542_v2  ;;  %1392 = vmatprep.subr.mxu1 %v2545_v59 }
 0x4e7   :  { %1322 = vmatpush1.msra.mxu0 %v2548_v53  ;;  %1393 = vmatpush1.msra.mxu1 %v2551_v0 }
 0x4e8   :  { %1323 = vmatprep.subr.mxu0 %v2554_v3  ;;  %1394 = vmatprep.subr.mxu1 %v2557_v60 }
 0x4e9   :  { %1324 = vmatpush1.msra.mxu0 %v3073_v39  ;;  %1395 = vmatpush1.msra.mxu1 %v3074_v41 }
 0x4ea   :  { %1325 = vmatprep.subr.mxu0 %v3075_v48  ;;  %1396 = vmatprep.subr.mxu1 %v3076_v63 }
 0x4eb   :  { %1326 = vmatpush1.msra.mxu0 %v3077_v6  ;;  %1397 = vmatpush1.msra.mxu1 %v3078_v8  ;;  %v3101_v6 = vld [vmem:[#allocation35_spill] sm:$0xff] }
 0x4ec   :  { %1327 = vmatprep.subr.mxu0 %v3079_v9  ;;  %1398 = vmatprep.subr.mxu1 %v3080_v5 }
 0x4ed   :  { %1328 = vmatpush1.msra.mxu0 %v3081_v54  ;;  %1399 = vmatpush1.msra.mxu1 %v3082_v52  ;;  %v3092_v54 = vld [vmem:[#allocation28_spill] sm:$0xff]  ;;  %v3093_v52 = vld [vmem:[#allocation29_spill] sm:$0xff] }
 0x4ee   :  { %1329 = vmatprep.subr.mxu0 %v3083_v47  ;;  %1400 = vmatprep.subr.mxu1 %v3084_v7  ;;  %v3094_v47 = vmov 0.0   ;;  %v3095_v7 = vld [vmem:[#allocation30_spill] sm:$0xff] }
 0x4ef   :  { %1330 = vmatpush1.msra.mxu0 %v3085_v26  ;;  %1401 = vmatpush1.msra.mxu1 %v3086_v29  ;;  %v3096_v29 = vld [vmem:[#allocation7_spill] sm:$0xff] }
 0x4f0   :  { %1331 = vmatprep.subr.mxu0 %v3087_v46  ;;  %1402 = vmatprep.subr.mxu1 %v3088_v56  ;;  %v3097_v46 = vld [vmem:[#allocation8_spill] sm:$0xff]  ;;  %v76_v56 = vpop.permute.xlu1 %75 }
 0x4f1   :  { %1332 = vmatpush1.msra.mxu0 %v3089_v33  ;;  %1403 = vmatpush1.msra.mxu1 %v3090_v31  ;;  %v3098_v33 = vld [vmem:[#allocation31_spill] sm:$0xff]  ;;  %v3099_v31 = vld [vmem:[#allocation32_spill] sm:$0xff] }
 0x4f2   :  { %1333 = vmatprep.subr.mxu0 %v3091_v49  ;;  %1404 = vmatprep.subr.mxu1 %v3092_v54  ;;  %v129_v26 = vmul.f32 %v3098_v33, %v76_v56  ;;  %v130_v5 = vmul.f32 %v3099_v31, %v76_v56  ;;  %v132_v31 = vmul.f32 %v2180_v62, %v76_v56 }
 0x4f3   :  { %1334 = vmatpush1.msra.mxu0 %v3093_v52  ;;  %1367 = vmatprep.mubr.f32.mxu0 %v3094_v47  ;;  %v3100_v52 = vld [vmem:[#allocation34_spill] sm:$0xff] }
 0x4f4   :  { %1405 = vmatpush1.msra.mxu1 %v3095_v7  ;;  %1438 = vmatprep.mubr.f32.mxu1 %v3094_v47  ;;  %v183_v49 = vadd.f32 %v3048_v35, %v129_v26  ;;  %v131_v8 = vmul.f32 %v3100_v52, %v76_v56  ;;  %v184_v63 = vadd.f32 %v3101_v6, %v130_v5 }
 0x4f5   :  { %1471 = vmatprep.subr.mxu0 %v3096_v29  ;;  %1542 = vmatprep.subr.mxu1 %v3097_v46 }
 0x4f6   :  { %v185_v29 = vadd.f32 %v2177_v51, %v131_v8 }
 0x594   :  { %v1201_v54 = vpop.f32.mrf.mxu0  ;;  %v1272_v41 = vpop.f32.mrf.mxu1 }
 0x595   :  { %v1277_v9 = vadd.f32 %v1201_v54, %v183_v49  ;;  %v1279_v39 = vadd.f32 %v1272_v41, %v185_v29  ;;  %v186_v54 = vadd.f32 %v2184_v61, %v132_v31 }
 0x596   :  { %v1203_v7 = vpop.f32.mrf.mxu0  ;;  %v1274_v33 = vpop.f32.mrf.mxu1 }
 0x597   :  { %v1281_v48 = vmul.f32 0.5, %v1277_v9  ;;  %v1278_v47 = vadd.f32 %v1203_v7, %v184_v63  ;;  %v1280_v26 = vadd.f32 %v1274_v33, %v186_v54 }
 0x599   :  { %1719 = vtanh.f32 %v1281_v48  ;;  %v1285_v46 = vmul.f32 0.5, %v1278_v47  ;;  %v1290_v49 = vmul.f32 0.5, %v1280_v26 }
 0x59b   :  { %1721 = vtanh.f32 %v1285_v46 }
 0x59c   :  { %1723 = vtanh.f32 %v1279_v39 }
 0x59d   :  { %1725 = vtanh.f32 %v1290_v49 }
 0x5a6   :  { %v1720_v52 = vpop.eup %1719 }
 0x5a7   :  { %v1283_v5 = vmul.f32 0.5, %v1720_v52 }
 0x5a8   :  { %v1722_v6 = vpop.eup %1721 }
 0x5a9   :  { %v1284_v9 = vadd.f32 0.5, %v1283_v5  ;;  %v1287_v63 = vmul.f32 0.5, %v1722_v6  ;;  %v1724_v7 = vpop.eup %1723 }
 0x5aa   :  { %v1726_v39 = vpop.eup %1725 }
 0x5ab   :  { %v1288_v48 = vadd.f32 0.5, %v1287_v63  ;;  %v1295_v41 = vmul.f32 %v1724_v7, %v1284_v9  ;;  %v1292_v56 = vmul.f32 0.5, %v1726_v39 }
 0x5ad   :  { %v1294_v8 = vmul.f32 %v1288_v48, %v2639_v28  ;;  %v1293_v31 = vadd.f32 0.5, %v1292_v56 }
 0x5af   :  { %v2717_v47 = vadd.f32 %v1295_v41, %v1294_v8 }
 0x5b1   :  { %1727 = vtanh.f32 %v2717_v47 }
 0x5be   :  { %v1728_v33 = vpop.eup %1727 }
 0x5bf   :  { %v1298_v29 = vmul.f32 %v1728_v33, %v1293_v31 }
 0x5c1   :  { %1368 = vmatmul.mubr.f32.vlgmr.msra.gmra.mxu0 %v1298_v29  ;;  %1439 = vmatmul.mubr.f32.vlgmr.msra.gmra.mxu1 %v1298_v29 }
 0x5c2   :  { %1472 = vmatpush1.msra.mxu0 %v2440_v10  ;;  %1543 = vmatpush1.msra.mxu1 %v2443_v11  ;;  %v3102_v10 = vld [vmem:[#allocation9_spill] sm:$0xff]  ;;  %v3103_v11 = vld [vmem:[#allocation10_spill] sm:$0xff] }
 0x5c3   :  { %1473 = vmatprep.subr.mxu0 %v2446_v55  ;;  %1544 = vmatprep.subr.mxu1 %v2449_v12  ;;  %v3104_v55 = vld [vmem:[#allocation11_spill] sm:$0xff]  ;;  %v3105_v12 = vld [vmem:[#allocation12_spill] sm:$0xff] }
 0x5c4   :  { %1474 = vmatpush1.msra.mxu0 %v2452_v13  ;;  %1545 = vmatpush1.msra.mxu1 %v2455_v14  ;;  %v3106_v13 = vld [vmem:[#allocation13_spill] sm:$0xff]  ;;  %v3107_v14 = vld [vmem:[#allocation14_spill] sm:$0xff] }
 0x5c5   :  { %1475 = vmatprep.subr.mxu0 %v2458_v15  ;;  %1546 = vmatprep.subr.mxu1 %v2461_v16  ;;  %v3108_v15 = vld [vmem:[#allocation15_spill] sm:$0xff]  ;;  %v3109_v16 = vld [vmem:[#allocation16_spill] sm:$0xff] }
 0x5c6   :  { %1476 = vmatpush1.msra.mxu0 %v2464_v17  ;;  %1547 = vmatpush1.msra.mxu1 %v2467_v18  ;;  %v3110_v17 = vld [vmem:[#allocation17_spill] sm:$0xff]  ;;  %v3111_v18 = vld [vmem:[#allocation18_spill] sm:$0xff] }
 0x5c7   :  { %1477 = vmatprep.subr.mxu0 %v2470_v19  ;;  %1548 = vmatprep.subr.mxu1 %v2473_v20  ;;  %v3112_v19 = vld [vmem:[#allocation19_spill] sm:$0xff]  ;;  %v3113_v20 = vld [vmem:[#allocation20_spill] sm:$0xff] }
 0x5c8   :  { %1478 = vmatpush1.msra.mxu0 %v2476_v21  ;;  %1549 = vmatpush1.msra.mxu1 %v2479_v22  ;;  %v3114_v21 = vld [vmem:[#allocation21_spill] sm:$0xff]  ;;  %v3115_v22 = vld [vmem:[#allocation22_spill] sm:$0xff] }
 0x5c9   :  { %1479 = vmatprep.subr.mxu0 %v2482_v23  ;;  %1550 = vmatprep.subr.mxu1 %v2485_v24  ;;  %v3116_v23 = vld [vmem:[#allocation23_spill] sm:$0xff]  ;;  %v3117_v24 = vld [vmem:[#allocation24_spill] sm:$0xff] }
 0x5ca   :  { %1480 = vmatpush1.msra.mxu0 %v2488_v25  ;;  %1551 = vmatpush1.msra.mxu1 %v2491_v27  ;;  %v3118_v25 = vld [vmem:[#allocation25_spill] sm:$0xff]  ;;  %v3119_v27 = vld [vmem:[#allocation26_spill] sm:$0xff] }
 0x5cb   :  { %1481 = vmatprep.subr.mxu0 %v2494_v30  ;;  %1552 = vmatprep.subr.mxu1 %v2497_v32  ;;  %v3120_v30 = vld [vmem:[#allocation27_spill] sm:$0xff]  ;;  %v3121_v32 = vld [vmem:[#allocation28_spill] sm:$0xff] }
 0x5cc   :  { %1482 = vmatpush1.msra.mxu0 %v2500_v34  ;;  %1553 = vmatpush1.msra.mxu1 %v2503_v36  ;;  %v3122_v34 = vld [vmem:[#allocation29_spill] sm:$0xff]  ;;  %v3123_v36 = vmov 0.0  }
 0x5cd   :  { %1483 = vmatprep.subr.mxu0 %v2506_v37  ;;  %1554 = vmatprep.subr.mxu1 %v2509_v38  ;;  %v3124_v37 = vld [vmem:[#allocation30_spill] sm:$0xff]  ;;  %v81_v38 = vpop.permute.xlu0 %80 }
 0x5ce   :  { %1484 = vmatpush1.msra.mxu0 %v2512_v40  ;;  %1555 = vmatpush1.msra.mxu1 %v2515_v42  ;;  %v3125_v40 = vld [vmem:[#allocation31_spill] sm:$0xff]  ;;  %v136_v52 = vmul.f32 %v2180_v62, %v81_v38 }
 0x5cf   :  { %1485 = vmatprep.subr.mxu0 %v2518_v43  ;;  %1556 = vmatprep.subr.mxu1 %v2521_v44  ;;  %v133_v42 = vmul.f32 %v3125_v40, %v81_v38  ;;  %v3126_v43 = vld [vmem:[#allocation32_spill] sm:$0xff] }
 0x5d0   :  { %1486 = vmatpush1.msra.mxu0 %v2524_v58  ;;  %1557 = vmatpush1.msra.mxu1 %v2527_v57  ;;  %v134_v44 = vmul.f32 %v3126_v43, %v81_v38  ;;  %v190_v54 = vadd.f32 %v2184_v61, %v136_v52 }
 0x5d1   :  { %1487 = vmatprep.subr.mxu0 %v2530_v1  ;;  %1558 = vmatprep.subr.mxu1 %v2533_v50  ;;  %v187_v58 = vadd.f32 %v3048_v35, %v133_v42  ;;  %v3127_v50 = vld [vmem:[#allocation34_spill] sm:$0xff] }
 0x5d2   :  { %1488 = vmatpush1.msra.mxu0 %v2536_v4  ;;  %1559 = vmatpush1.msra.mxu1 %v2539_v45  ;;  %v135_v4 = vmul.f32 %v3127_v50, %v81_v38  ;;  %v3128_v45 = vld [vmem:[#allocation35_spill] sm:$0xff] }
 0x5d3   :  { %1489 = vmatprep.subr.mxu0 %v2542_v2  ;;  %1560 = vmatprep.subr.mxu1 %v2545_v59  ;;  %v188_v2 = vadd.f32 %v3128_v45, %v134_v44 }
 0x5d4   :  { %1490 = vmatpush1.msra.mxu0 %v2548_v53  ;;  %1561 = vmatpush1.msra.mxu1 %v2551_v0 }
 0x5d5   :  { %1491 = vmatprep.subr.mxu0 %v2554_v3  ;;  %1562 = vmatprep.subr.mxu1 %v2557_v60  ;;  %v189_v60 = vadd.f32 %v2177_v51, %v135_v4 }
 0x5d6   :  { %1492 = vmatpush1.msra.mxu0 %v3102_v10  ;;  %1563 = vmatpush1.msra.mxu1 %v3103_v11 }
 0x5d7   :  { %1493 = vmatprep.subr.mxu0 %v3104_v55  ;;  %1564 = vmatprep.subr.mxu1 %v3105_v12  ;;  %v86_v12 = vpop.permute.xlu1 %85 }
 0x5d8   :  { %1494 = vmatpush1.msra.mxu0 %v3106_v13  ;;  %1565 = vmatpush1.msra.mxu1 %v3107_v14  ;;  %v137_v13 = vmul.f32 %v3125_v40, %v86_v12  ;;  %v138_v14 = vmul.f32 %v3126_v43, %v86_v12 }
 0x5d9   :  { %1495 = vmatprep.subr.mxu0 %v3108_v15  ;;  %1566 = vmatprep.subr.mxu1 %v3109_v16 }
 0x5da   :  { %1496 = vmatpush1.msra.mxu0 %v3110_v17  ;;  %1567 = vmatpush1.msra.mxu1 %v3111_v18  ;;  %v191_v15 = vadd.f32 %v3048_v35, %v137_v13  ;;  %v192_v18 = vadd.f32 %v3128_v45, %v138_v14 }
 0x5db   :  { %1497 = vmatprep.subr.mxu0 %v3112_v19  ;;  %1568 = vmatprep.subr.mxu1 %v3113_v20 }
 0x5dc   :  { %1498 = vmatpush1.msra.mxu0 %v3114_v21  ;;  %1569 = vmatpush1.msra.mxu1 %v3115_v22 }
 0x5dd   :  { %1499 = vmatprep.subr.mxu0 %v3116_v23  ;;  %1570 = vmatprep.subr.mxu1 %v3117_v24 }
 0x5de   :  { %1500 = vmatpush1.msra.mxu0 %v3118_v25  ;;  %1571 = vmatpush1.msra.mxu1 %v3119_v27  ;;  %v140_v25 = vmul.f32 %v2180_v62, %v86_v12 }
 0x5df   :  { %1501 = vmatprep.subr.mxu0 %v3120_v30  ;;  %1572 = vmatprep.subr.mxu1 %v3121_v32 }
 0x5e0   :  { %1502 = vmatpush1.msra.mxu0 %v3122_v34  ;;  %1535 = vmatprep.mubr.f32.mxu0 %v3123_v36  ;;  %v194_v35 = vadd.f32 %v2184_v61, %v140_v25  ;;  %v1660_v61 = vld [vmem:[%s2811_s4] ss:$0 sm:$0xff] }
 0x5e1   :  { %1573 = vmatpush1.msra.mxu1 %v3124_v37  ;;  %1606 = vmatprep.mubr.f32.mxu1 %v3123_v36 }
 0x681   :  { %v1369_v57 = vpop.f32.mrf.mxu0  ;;  %v1440_v3 = vpop.f32.mrf.mxu1 }
 0x682   :  { %v1445_v1 = vadd.f32 %v1369_v57, %v187_v58  ;;  %v1447_v6 = vadd.f32 %v1440_v3, %v189_v60 }
 0x683   :  { %v1371_v59 = vpop.f32.mrf.mxu0  ;;  %v1442_v46 = vpop.f32.mrf.mxu1 }
 0x684   :  { %v1449_v53 = vmul.f32 0.5, %v1445_v1  ;;  %v1446_v0 = vadd.f32 %v1371_v59, %v188_v2  ;;  %v1448_v26 = vadd.f32 %v1442_v46, %v190_v54  ;;  %v1661_v59 = vld [vmem:[#allocation3] ss:$0 sm:$0xff] }
 0x686   :  { %1729 = vtanh.f32 %v1449_v53  ;;  %v1453_v28 = vmul.f32 0.5, %v1446_v0  ;;  %v1458_v49 = vmul.f32 0.5, %v1448_v26 }
 0x688   :  { %1731 = vtanh.f32 %v1453_v28 }
 0x689   :  { %1733 = vtanh.f32 %v1447_v6 }
 0x68a   :  { %1735 = vtanh.f32 %v1458_v49 }
 0x693   :  { %v1730_v5 = vpop.eup %1729 }
 0x694   :  { %v1451_v9 = vmul.f32 0.5, %v1730_v5 }
 0x695   :  { %v1732_v63 = vpop.eup %1731 }
 0x696   :  { %v1452_v48 = vadd.f32 0.5, %v1451_v9  ;;  %v1455_v7 = vmul.f32 0.5, %v1732_v63  ;;  %v1734_v41 = vpop.eup %1733 }
 0x697   :  { %v1736_v33 = vpop.eup %1735 }
 0x698   :  { %v1456_v8 = vadd.f32 0.5, %v1455_v7  ;;  %v1463_v56 = vmul.f32 %v1734_v41, %v1452_v48  ;;  %v1460_v29 = vmul.f32 0.5, %v1736_v33 }
 0x69a   :  { %v1462_v39 = vmul.f32 %v1456_v8, %v2717_v47  ;;  %v1461_v10 = vadd.f32 0.5, %v1460_v29  ;;  %v139_v47 = vmul.f32 %v3127_v50, %v86_v12 }
 0x69c   :  { %v1464_v31 = vadd.f32 %v1463_v56, %v1462_v39  ;;  %v193_v23 = vadd.f32 %v2177_v51, %v139_v47 }
 0x69e   :  { %1737 = vtanh.f32 %v1464_v31 }
 0x6ab   :  { %v1738_v11 = vpop.eup %1737 }
 0x6ac   :  { %v1466_v55 = vmul.f32 %v1738_v11, %v1461_v10 }
 0x6ae   :  { %1536 = vmatmul.mubr.f32.vlgmr.msra.gmra.mxu0 %v1466_v55  ;;  %1607 = vmatmul.mubr.f32.vlgmr.msra.gmra.mxu1 %v1466_v55 }
 0x76e   :  { %v1537_v16 = vpop.f32.mrf.mxu0  ;;  %v1608_v22 = vpop.f32.mrf.mxu1 }
 0x76f   :  { %v1613_v17 = vadd.f32 %v1537_v16, %v191_v15  ;;  %v1615_v27 = vadd.f32 %v1608_v22, %v193_v23 }
 0x770   :  { %v1539_v19 = vpop.f32.mrf.mxu0  ;;  %v1610_v30 = vpop.f32.mrf.mxu1 }
 0x771   :  { %v1617_v20 = vmul.f32 0.5, %v1613_v17  ;;  %v1614_v21 = vadd.f32 %v1539_v19, %v192_v18  ;;  %v1616_v32 = vadd.f32 %v1610_v30, %v194_v35 }
 0x773   :  { %1739 = vtanh.f32 %v1617_v20  ;;  %v1621_v24 = vmul.f32 0.5, %v1614_v21  ;;  %v1626_v34 = vmul.f32 0.5, %v1616_v32 }
 0x775   :  { %1741 = vtanh.f32 %v1621_v24 }
 0x776   :  { %1743 = vtanh.f32 %v1615_v27 }
 0x777   :  { %1745 = vtanh.f32 %v1626_v34 }
 0x780   :  { %v1740_v36 = vpop.eup %1739 }
 0x781   :  { %v1619_v37 = vmul.f32 0.5, %v1740_v36 }
 0x782   :  { %v1742_v38 = vpop.eup %1741 }
 0x783   :  { %v1620_v40 = vadd.f32 0.5, %v1619_v37  ;;  %v1623_v42 = vmul.f32 0.5, %v1742_v38  ;;  %v1744_v44 = vpop.eup %1743 }
 0x784   :  { %v1746_v62 = vpop.eup %1745 }
 0x785   :  { %v1624_v43 = vadd.f32 0.5, %v1623_v42  ;;  %v1631_v58 = vmul.f32 %v1744_v44, %v1620_v40  ;;  %v1628_v1 = vmul.f32 0.5, %v1746_v62 }
 0x787   :  { %v1630_v51 = vmul.f32 %v1624_v43, %v1464_v31  ;;  %v1629_v50 = vadd.f32 0.5, %v1628_v1 }
 0x789   :  { %v1632_v57 = vadd.f32 %v1631_v58, %v1630_v51 }
 0x78b   :  { %1747 = vtanh.f32 %v1632_v57 }
 0x798   :  { %v1748_v4 = vpop.eup %1747 }
 0x799   :  { %v1634_v45 = vmul.f32 %v1748_v4, %v1629_v50 }
 0x79b   :  { %v1642_v2 = vmul.f32 %v1660_v61, %v1634_v45 }
 0x79d   :  { %1643 = vadd.xlane.f32.xlu0 %v1642_v2 }
 0x826   :  { %v1644_v53 = vpop.xlane.xlu0 %1643 }
 0x827   :  { %v1652_v0 = vadd.f32 %v1661_v59, %v1644_v53 }
 0x829   :  { %1654 = vst.msk [vmem:[%s2813_s6] sm:$0xff] %vm1653_vm0, %v1652_v0 }
 0x82a   :  { %1659 = vsyncpa [#allocation5], 1 }

</bundles_post_ra>
